<compile_context>
chip_gen: v7x
topology: tpu7x:2x2x1
jax: 0.10.0
libtpu: 0.0.40
codegen_flags: <defaults>
</compile_context>

<pallas_src>
import numpy as np
import jax
import jax.numpy as jnp
from jax.experimental import pallas as pl
from jax.experimental.pallas import tpu as pltpu

R = 16          # repeat (fixed in LinearModel.forward: sampler(repeat=16))
NDS = 4         # num_ds_dim
NLAYERS = 2     # num_ds_layers
NPARAMS = 3 * NDS
DELTA = 1e-6    # utils.delta in the NAF/torchkit reference
BETA = 0.9      # hard-concrete temperature (self.beta = 0.9)
LOG1M_DELTA = float(np.log(1.0 - DELTA))

VMEM_LIMIT_BYTES = 32 * 1024 * 1024   # safe on v5e (raises 16MiB default) and v7x (64MiB phys)


# --------------------------------------------------------------------------------------
# Kernel A: deep-sigmoid flow (2 layers) + hard-concrete gate, tiled over p.
# --------------------------------------------------------------------------------------
def _flow_gate_kernel(spl_ref, u_ref, dsp_ref, logalpha_ref, scale_ref,
                      Theta_ref, theta_ref, logdet_ref):
    h = spl_ref[...]                                     # (R, tp)  flow input (gaussians)
    logdet = jnp.zeros_like(h)

    for layer in range(NLAYERS):
        base = layer * NPARAMS

        # ---- narrow (1, tp) parameter prep, folded BEFORE any (R, tp) broadcast ----
        a = [jax.nn.softplus(dsp_ref[base + k:base + k + 1, :]) for k in range(NDS)]
        b = [dsp_ref[base + NDS + k:base + NDS + k + 1, :] for k in range(NDS)]
        wl = [dsp_ref[base + 2 * NDS + k:base + 2 * NDS + k + 1, :] for k in range(NDS)]

        wmax = wl[0]
        for k in range(1, NDS):
            wmax = jnp.maximum(wmax, wl[k])
        wexp = [jnp.exp(w - wmax) for w in wl]
        wsum = wexp[0]
        for k in range(1, NDS):
            wsum = wsum + wexp[k]
        inv_wsum = 1.0 / wsum
        log_wsum = jnp.log(wsum)
        wnorm = [e * inv_wsum for e in wexp]                                  # softmax(w)
        cw = [(wl[k] - wmax) - log_wsum + jnp.log(a[k]) for k in range(NDS)]  # log_softmax + log a

        # ---- wide (R, tp) work: sigmoid mixture + online logsumexp of log-Jacobian ----
        x_pre = jnp.zeros_like(h)
        m = None
        se = None
        for k in range(NDS):
            pre = a[k] * h + b[k]                        # (R, tp)
            logsig = jax.nn.log_sigmoid(pre)
            x_pre = x_pre + wnorm[k] * jnp.exp(logsig)   # sigmoid(pre) == exp(log_sigmoid(pre))
            # logsig(pre) + logsig(-pre) == 2*logsig(pre) - pre
            term = cw[k] + 2.0 * logsig - pre            # (R, tp)
            if m is None:
                m, se = term, jnp.ones_like(term)
            else:
                m_new = jnp.maximum(m, term)
                se = se * jnp.exp(m - m_new) + jnp.exp(term - m_new)
                m = m_new
        logj = m + jnp.log(se)                           # logsumexp over NDS components

        xc = x_pre * (1.0 - DELTA) + DELTA * 0.5
        lx = jnp.log(xc)
        l1mx = jnp.log(1.0 - xc)
        h = lx - l1mx
        logdet = logj + LOG1M_DELTA - (lx + l1mx) + logdet

    theta = h                                            # (R, tp)

    # ---- hard-concrete gate (nn.Module default training=True branch) ----
    zeta = jnp.exp(scale_ref[...]) + 1.0                 # (1, tp)
    gamma = -(zeta - 1.0)
    u = u_ref[...]                                       # (R, tp)
    s = jax.nn.sigmoid((jnp.log(u / (1.0 - u)) + logalpha_ref[...]) / BETA)
    z = jnp.clip((zeta - gamma) * s + gamma, 0.0, 1.0)

    Theta_ref[...] = z * theta
    theta_ref[...] = theta
    logdet_ref[...] = logdet
    # TODO(synk): self.logq / self.qz side attributes (only used by kl()) are not emitted.


# --------------------------------------------------------------------------------------
# Kernel B: out_t = Theta @ x^T  -> (R, N), N on lanes.  p is the "arbitrary" reduction
# axis accumulated into a VMEM scratch; N is "parallel" (megacore-sharded on v7x).
# --------------------------------------------------------------------------------------
def _matmul_kernel(theta_ref, x_ref, out_ref, acc_ref):
    @pl.when(pl.program_id(1) == 0)
    def _():
        acc_ref[...] = jnp.zeros_like(acc_ref)

    # (R, tp) x (tn, tp) contracting the p (lane) axes -> (R, tn)
    acc_ref[...] += jax.lax.dot_general(
        theta_ref[...], x_ref[...], (((1,), (1,)), ((), ())),
        preferred_element_type=jnp.float32)

    @pl.when(pl.program_id(1) == pl.num_programs(1) - 1)
    def _():
        out_ref[...] = acc_ref[...].astype(out_ref.dtype)
    # NOTE: a bf16 cast of the MXU operands (keeping f32 accumulation) is a further v6e/v7x
    # speedup but loosens numerics below the 1e-5 check, so it is left out here.


def _largest_divisor_tile(total, cap, unit):
    """Largest multiple of `unit` that divides `total` and is <= cap (falls back to total)."""
    best = None
    t = unit
    while t <= min(total, cap):
        if total % t == 0:
            best = t
        t += unit
    return best if best is not None else total


def linear_model_forward(x, spl, u, dsparams_t, logalpha, scale_param,
                         tn_cap=512, tp_cap=512, flow_tp_cap=512):
    """x: (N, p); spl, u: (R, p); dsparams_t: (NLAYERS*NPARAMS, p); logalpha, scale: (p,)."""
    N, P = x.shape
    assert spl.shape == (R, P) and u.shape == (R, P)
    assert dsparams_t.shape == (NLAYERS * NPARAMS, P)
    assert P % 128 == 0, "pad p to a multiple of 128 (lane width)"
    assert N % 128 == 0, "pad N to a multiple of 128 (out is stored with N on lanes)"

    la = logalpha.reshape(1, P)
    sc = scale_param.reshape(1, P)

    # ---- Kernel A: flow + gate over p-tiles ----
    tp_flow = _largest_divisor_tile(P, flow_tp_cap, 128)
    Theta, theta, logdet = pl.pallas_call(
        _flow_gate_kernel,
        out_shape=(jax.ShapeDtypeStruct((R, P), jnp.float32),
                   jax.ShapeDtypeStruct((R, P), jnp.float32),
                   jax.ShapeDtypeStruct((R, P), jnp.float32)),
        grid_spec=pltpu.PrefetchScalarGridSpec(
            num_scalar_prefetch=0,
            grid=(P // tp_flow,),
            in_specs=[
                pl.BlockSpec((R, tp_flow), lambda i: (0, i)),
                pl.BlockSpec((R, tp_flow), lambda i: (0, i)),
                pl.BlockSpec((NLAYERS * NPARAMS, tp_flow), lambda i: (0, i)),
                pl.BlockSpec((1, tp_flow), lambda i: (0, i)),
                pl.BlockSpec((1, tp_flow), lambda i: (0, i)),
            ],
            out_specs=[
                pl.BlockSpec((R, tp_flow), lambda i: (0, i)),
                pl.BlockSpec((R, tp_flow), lambda i: (0, i)),
                pl.BlockSpec((R, tp_flow), lambda i: (0, i)),
            ],
        ),
        compiler_params=pltpu.CompilerParams(
            dimension_semantics=("parallel",),
            vmem_limit_bytes=VMEM_LIMIT_BYTES),
    )(spl, u, dsparams_t, la, sc)

    # ---- Kernel B: tiled MXU matmul, transposed so N is lane-dense ----
    tn = _largest_divisor_tile(N, tn_cap, 128)
    tp = _largest_divisor_tile(P, tp_cap, 128)
    out_t = pl.pallas_call(
        _matmul_kernel,
        out_shape=jax.ShapeDtypeStruct((R, N), jnp.float32),
        grid_spec=pltpu.PrefetchScalarGridSpec(
            num_scalar_prefetch=0,
            grid=(N // tn, P // tp),
            in_specs=[
                pl.BlockSpec((R, tp), lambda n, k: (0, k)),
                pl.BlockSpec((tn, tp), lambda n, k: (n, k)),
            ],
            out_specs=pl.BlockSpec((R, tn), lambda n, k: (0, n)),
            scratch_shapes=[pltpu.VMEM((R, tn), jnp.float32)],
        ),
        compiler_params=pltpu.CompilerParams(
            dimension_semantics=("parallel", "arbitrary"),
            vmem_limit_bytes=VMEM_LIMIT_BYTES),
    )(Theta, x)

    out = jnp.transpose(out_t)                 # (N, R), as in the PyTorch forward
    return out, theta, logdet


# --------------------------------------------------------------------------------------
# Pure-JAX reference mirroring the PyTorch forward (vectorized 3-D form).
# --------------------------------------------------------------------------------------
def reference_forward(x, spl, u, dsparams_t, logalpha, scale_param):
    dsparams = dsparams_t.T                               # (p, NLAYERS*NPARAMS)
    Rr, p = spl.shape
    h = spl
    logdet = jnp.zeros_like(h)
    for layer in range(NLAYERS):
        params = dsparams[:, layer * NPARAMS:(layer + 1) * NPARAMS]        # (p, 12)
        params = jnp.broadcast_to(params[None], (Rr, p, NPARAMS))
        a = jax.nn.softplus(params[:, :, 0:NDS])
        b = params[:, :, NDS:2 * NDS]
        wlog = params[:, :, 2 * NDS:3 * NDS]
        w = jax.nn.softmax(wlog, axis=2)
        pre = a * h[:, :, None] + b
        sigm = jax.nn.sigmoid(pre)
        x_pre = jnp.sum(w * sigm, axis=2)
        xc = x_pre * (1.0 - DELTA) + DELTA * 0.5
        h_new = jnp.log(xc) - jnp.log(1.0 - xc)
        logj = (jax.nn.log_softmax(wlog, axis=2) + jax.nn.log_sigmoid(pre)
                + jax.nn.log_sigmoid(-pre) + jnp.log(a))
        logj = jax.scipy.special.logsumexp(logj, axis=2)
        logdet = logj + jnp.log(1.0 - DELTA) - (jnp.log(xc) + jnp.log(1.0 - xc)) + logdet
        h = h_new
    theta = h
    zeta = jnp.exp(scale_param) + 1.0
    gamma = -(zeta - 1.0)
    s = jax.nn.sigmoid((jnp.log(u / (1.0 - u)) + logalpha[None, :]) / BETA)
    z = jnp.clip((zeta - gamma)[None, :] * s + gamma[None, :], 0.0, 1.0)
    Theta = z * theta
    return x @ Theta.T, theta, logdet


if __name__ == "__main__":
    P = 256   # number of regression coefficients (multiple of 128 for lane density)
    N = 512   # number of data rows (multiple of 128 so out_t stores are lane-dense)

    key = jax.random.PRNGKey(0)
    kx, kspl, ku, kds = jax.random.split(key, 4)

    # Module parameters (deterministic init matching __init__), stored in (24, p) layout.
    dsparams_t = jax.random.uniform(kds, (NLAYERS * NPARAMS, P),
                                    minval=-0.001, maxval=0.001, dtype=jnp.float32)
    scale_param = jnp.zeros((P,), jnp.float32)                      # -0.0 * ones(p)
    logalpha = jnp.full((P,), np.log(0.1 / 0.9), jnp.float32)       # init * ones(p)

    # Inputs + RNG draws that torch would sample inside forward()
    x = jax.random.normal(kx, (N, P), dtype=jnp.float32)
    spl = jax.random.normal(kspl, (R, P), dtype=jnp.float32)        # Normal(0,1) slab base
    u = jax.random.uniform(ku, (R, P), minval=1e-6, maxval=1.0 - 1e-6,
                           dtype=jnp.float32)                       # Uniform(0,1) gate noise

    # Small tile caps here so the multi-tile / accumulation paths are actually exercised.
    out, theta, logdet = jax.block_until_ready(
        linear_model_forward(x, spl, u, dsparams_t, logalpha, scale_param,
                             tn_cap=256, tp_cap=128, flow_tp_cap=128))

    out_ref, theta_ref, logdet_ref = reference_forward(
        x, spl, u, dsparams_t, logalpha, scale_param)

    np.testing.assert_allclose(np.asarray(out), np.asarray(out_ref), rtol=1e-5, atol=1e-4)
    np.testing.assert_allclose(np.asarray(theta), np.asarray(theta_ref), rtol=1e-5, atol=1e-5)
    np.testing.assert_allclose(np.asarray(logdet), np.asarray(logdet_ref), rtol=1e-4, atol=1e-4)

    print("KERNEL_OK")
</pallas_src>

<mosaic_0001>
module attributes {stable_mosaic.version = 11 : i64} {
  func.func @_flow_gate_kernel(%arg0: i32, %arg1: memref<16x128xf32, #tpu.memory_space<vmem>>, %arg2: memref<16x128xf32, #tpu.memory_space<vmem>>, %arg3: memref<24x128xf32, #tpu.memory_space<vmem>>, %arg4: memref<1x128xf32, #tpu.memory_space<vmem>>, %arg5: memref<1x128xf32, #tpu.memory_space<vmem>>, %arg6: memref<16x128xf32, #tpu.memory_space<vmem>>, %arg7: memref<16x128xf32, #tpu.memory_space<vmem>>, %arg8: memref<16x128xf32, #tpu.memory_space<vmem>>) attributes {dimension_semantics = [#tpu.dimension_semantics<parallel>], iteration_bounds = array<i64: 2>, scalar_prefetch = 0 : i64, scratch_operands = 0 : i64, tpu.core_type = #tpu.core_type<tc>, window_params = [{transform_indices = @transform_0, window_bounds = array<i64: 16, 128>}, {transform_indices = @transform_1, window_bounds = array<i64: 16, 128>}, {transform_indices = @transform_2, window_bounds = array<i64: 24, 128>}, {transform_indices = @transform_3, window_bounds = array<i64: 1, 128>}, {transform_indices = @transform_4, window_bounds = array<i64: 1, 128>}, {transform_indices = @transform_5, window_bounds = array<i64: 16, 128>}, {transform_indices = @transform_6, window_bounds = array<i64: 16, 128>}, {transform_indices = @transform_7, window_bounds = array<i64: 16, 128>}]} {
    %c0 = arith.constant 0 : index
    %c0_0 = arith.constant 0 : index
    %0 = vector.load %arg1[%c0, %c0_0] : memref<16x128xf32, #tpu.memory_space<vmem>>, vector<16x128xf32>
    %cst = arith.constant 0.000000e+00 : f32
    %1 = vector.broadcast %cst : f32 to vector<16x128xf32>
    %c0_1 = arith.constant 0 : index
    %c0_2 = arith.constant 0 : index
    %2 = vector.load %arg3[%c0_1, %c0_2] : memref<24x128xf32, #tpu.memory_space<vmem>>, vector<1x128xf32>
    %cst_3 = arith.constant 0.000000e+00 : f32
    %3 = vector.broadcast %cst_3 : f32 to vector<1x128xf32>
    %4 = arith.maximumf %2, %3 : vector<1x128xf32>
    %5 = vector.broadcast %cst_3 : f32 to vector<1x128xf32>
    %6 = arith.subf %2, %5 : vector<1x128xf32>
    %7 = arith.cmpf one, %6, %6 : vector<1x128xf32>
    %8 = vector.broadcast %cst_3 : f32 to vector<1x128xf32>
    %9 = arith.addf %2, %8 : vector<1x128xf32>
    %10 = math.absf %6 : vector<1x128xf32>
    %cst_4 = arith.constant 0.000000e+00 : f32
    %11 = vector.broadcast %cst_4 : f32 to vector<1x128xf32>
    %12 = arith.subf %11, %10 : vector<1x128xf32>
    %13 = math.exp %12 : vector<1x128xf32>
    %14 = math.log1p %13 : vector<1x128xf32>
    %15 = arith.addf %4, %14 : vector<1x128xf32>
    %16 = arith.select %7, %9, %15 : vector<1x128xi1>, vector<1x128xf32>
    %c1 = arith.constant 1 : index
    %c0_5 = arith.constant 0 : index
    %17 = vector.load %arg3[%c1, %c0_5] : memref<24x128xf32, #tpu.memory_space<vmem>>, vector<1x128xf32>
    %cst_6 = arith.constant 0.000000e+00 : f32
    %18 = vector.broadcast %cst_6 : f32 to vector<1x128xf32>
    %19 = arith.maximumf %17, %18 : vector<1x128xf32>
    %20 = vector.broadcast %cst_6 : f32 to vector<1x128xf32>
    %21 = arith.subf %17, %20 : vector<1x128xf32>
    %22 = arith.cmpf one, %21, %21 : vector<1x128xf32>
    %23 = vector.broadcast %cst_6 : f32 to vector<1x128xf32>
    %24 = arith.addf %17, %23 : vector<1x128xf32>
    %25 = math.absf %21 : vector<1x128xf32>
    %cst_7 = arith.constant 0.000000e+00 : f32
    %26 = vector.broadcast %cst_7 : f32 to vector<1x128xf32>
    %27 = arith.subf %26, %25 : vector<1x128xf32>
    %28 = math.exp %27 : vector<1x128xf32>
    %29 = math.log1p %28 : vector<1x128xf32>
    %30 = arith.addf %19, %29 : vector<1x128xf32>
    %31 = arith.select %22, %24, %30 : vector<1x128xi1>, vector<1x128xf32>
    %c2 = arith.constant 2 : index
    %c0_8 = arith.constant 0 : index
    %32 = vector.load %arg3[%c2, %c0_8] : memref<24x128xf32, #tpu.memory_space<vmem>>, vector<1x128xf32>
    %cst_9 = arith.constant 0.000000e+00 : f32
    %33 = vector.broadcast %cst_9 : f32 to vector<1x128xf32>
    %34 = arith.maximumf %32, %33 : vector<1x128xf32>
    %35 = vector.broadcast %cst_9 : f32 to vector<1x128xf32>
    %36 = arith.subf %32, %35 : vector<1x128xf32>
    %37 = arith.cmpf one, %36, %36 : vector<1x128xf32>
    %38 = vector.broadcast %cst_9 : f32 to vector<1x128xf32>
    %39 = arith.addf %32, %38 : vector<1x128xf32>
    %40 = math.absf %36 : vector<1x128xf32>
    %cst_10 = arith.constant 0.000000e+00 : f32
    %41 = vector.broadcast %cst_10 : f32 to vector<1x128xf32>
    %42 = arith.subf %41, %40 : vector<1x128xf32>
    %43 = math.exp %42 : vector<1x128xf32>
    %44 = math.log1p %43 : vector<1x128xf32>
    %45 = arith.addf %34, %44 : vector<1x128xf32>
    %46 = arith.select %37, %39, %45 : vector<1x128xi1>, vector<1x128xf32>
    %c3 = arith.constant 3 : index
    %c0_11 = arith.constant 0 : index
    %47 = vector.load %arg3[%c3, %c0_11] : memref<24x128xf32, #tpu.memory_space<vmem>>, vector<1x128xf32>
    %cst_12 = arith.constant 0.000000e+00 : f32
    %48 = vector.broadcast %cst_12 : f32 to vector<1x128xf32>
    %49 = arith.maximumf %47, %48 : vector<1x128xf32>
    %50 = vector.broadcast %cst_12 : f32 to vector<1x128xf32>
    %51 = arith.subf %47, %50 : vector<1x128xf32>
    %52 = arith.cmpf one, %51, %51 : vector<1x128xf32>
    %53 = vector.broadcast %cst_12 : f32 to vector<1x128xf32>
    %54 = arith.addf %47, %53 : vector<1x128xf32>
    %55 = math.absf %51 : vector<1x128xf32>
    %cst_13 = arith.constant 0.000000e+00 : f32
    %56 = vector.broadcast %cst_13 : f32 to vector<1x128xf32>
    %57 = arith.subf %56, %55 : vector<1x128xf32>
    %58 = math.exp %57 : vector<1x128xf32>
    %59 = math.log1p %58 : vector<1x128xf32>
    %60 = arith.addf %49, %59 : vector<1x128xf32>
    %61 = arith.select %52, %54, %60 : vector<1x128xi1>, vector<1x128xf32>
    %c4 = arith.constant 4 : index
    %c0_14 = arith.constant 0 : index
    %62 = vector.load %arg3[%c4, %c0_14] : memref<24x128xf32, #tpu.memory_space<vmem>>, vector<1x128xf32>
    %c5 = arith.constant 5 : index
    %c0_15 = arith.constant 0 : index
    %63 = vector.load %arg3[%c5, %c0_15] : memref<24x128xf32, #tpu.memory_space<vmem>>, vector<1x128xf32>
    %c6 = arith.constant 6 : index
    %c0_16 = arith.constant 0 : index
    %64 = vector.load %arg3[%c6, %c0_16] : memref<24x128xf32, #tpu.memory_space<vmem>>, vector<1x128xf32>
    %c7 = arith.constant 7 : index
    %c0_17 = arith.constant 0 : index
    %65 = vector.load %arg3[%c7, %c0_17] : memref<24x128xf32, #tpu.memory_space<vmem>>, vector<1x128xf32>
    %c8 = arith.constant 8 : index
    %c0_18 = arith.constant 0 : index
    %66 = vector.load %arg3[%c8, %c0_18] : memref<24x128xf32, #tpu.memory_space<vmem>>, vector<1x128xf32>
    %c9 = arith.constant 9 : index
    %c0_19 = arith.constant 0 : index
    %67 = vector.load %arg3[%c9, %c0_19] : memref<24x128xf32, #tpu.memory_space<vmem>>, vector<1x128xf32>
    %c10 = arith.constant 10 : index
    %c0_20 = arith.constant 0 : index
    %68 = vector.load %arg3[%c10, %c0_20] : memref<24x128xf32, #tpu.memory_space<vmem>>, vector<1x128xf32>
    %c11 = arith.constant 11 : index
    %c0_21 = arith.constant 0 : index
    %69 = vector.load %arg3[%c11, %c0_21] : memref<24x128xf32, #tpu.memory_space<vmem>>, vector<1x128xf32>
    %70 = arith.maximumf %66, %67 : vector<1x128xf32>
    %71 = arith.maximumf %70, %68 : vector<1x128xf32>
    %72 = arith.maximumf %71, %69 : vector<1x128xf32>
    %73 = arith.subf %66, %72 : vector<1x128xf32>
    %74 = math.exp %73 : vector<1x128xf32>
    %75 = arith.subf %67, %72 : vector<1x128xf32>
    %76 = math.exp %75 : vector<1x128xf32>
    %77 = arith.subf %68, %72 : vector<1x128xf32>
    %78 = math.exp %77 : vector<1x128xf32>
    %79 = arith.subf %69, %72 : vector<1x128xf32>
    %80 = math.exp %79 : vector<1x128xf32>
    %81 = arith.addf %74, %76 : vector<1x128xf32>
    %82 = arith.addf %81, %78 : vector<1x128xf32>
    %83 = arith.addf %82, %80 : vector<1x128xf32>
    %cst_22 = arith.constant 1.000000e+00 : f32
    %84 = vector.broadcast %cst_22 : f32 to vector<1x128xf32>
    %85 = arith.divf %84, %83 : vector<1x128xf32>
    %86 = math.log %83 : vector<1x128xf32>
    %87 = arith.mulf %74, %85 : vector<1x128xf32>
    %88 = arith.mulf %76, %85 : vector<1x128xf32>
    %89 = arith.mulf %78, %85 : vector<1x128xf32>
    %90 = arith.mulf %80, %85 : vector<1x128xf32>
    %91 = arith.subf %66, %72 : vector<1x128xf32>
    %92 = arith.subf %91, %86 : vector<1x128xf32>
    %93 = math.log %16 : vector<1x128xf32>
    %94 = arith.addf %92, %93 : vector<1x128xf32>
    %95 = arith.subf %67, %72 : vector<1x128xf32>
    %96 = arith.subf %95, %86 : vector<1x128xf32>
    %97 = math.log %31 : vector<1x128xf32>
    %98 = arith.addf %96, %97 : vector<1x128xf32>
    %99 = arith.subf %68, %72 : vector<1x128xf32>
    %100 = arith.subf %99, %86 : vector<1x128xf32>
    %101 = math.log %46 : vector<1x128xf32>
    %102 = arith.addf %100, %101 : vector<1x128xf32>
    %103 = arith.subf %69, %72 : vector<1x128xf32>
    %104 = arith.subf %103, %86 : vector<1x128xf32>
    %105 = math.log %61 : vector<1x128xf32>
    %106 = arith.addf %104, %105 : vector<1x128xf32>
    %cst_23 = arith.constant 0.000000e+00 : f32
    %107 = vector.broadcast %cst_23 : f32 to vector<16x128xf32>
    %108 = vector.broadcast %16 : vector<1x128xf32> to vector<16x128xf32>
    %109 = arith.mulf %108, %0 : vector<16x128xf32>
    %110 = vector.broadcast %62 : vector<1x128xf32> to vector<16x128xf32>
    %111 = arith.addf %109, %110 : vector<16x128xf32>
    %cst_24 = arith.constant 0.000000e+00 : f32
    %112 = vector.broadcast %cst_24 : f32 to vector<16x128xf32>
    %113 = arith.subf %112, %111 : vector<16x128xf32>
    %cst_25 = arith.constant 0.000000e+00 : f32
    %114 = vector.broadcast %cst_25 : f32 to vector<16x128xf32>
    %115 = arith.maximumf %113, %114 : vector<16x128xf32>
    %116 = vector.broadcast %cst_25 : f32 to vector<16x128xf32>
    %117 = arith.subf %113, %116 : vector<16x128xf32>
    %118 = arith.cmpf one, %117, %117 : vector<16x128xf32>
    %119 = vector.broadcast %cst_25 : f32 to vector<16x128xf32>
    %120 = arith.addf %113, %119 : vector<16x128xf32>
    %121 = math.absf %117 : vector<16x128xf32>
    %cst_26 = arith.constant 0.000000e+00 : f32
    %122 = vector.broadcast %cst_26 : f32 to vector<16x128xf32>
    %123 = arith.subf %122, %121 : vector<16x128xf32>
    %124 = math.exp %123 : vector<16x128xf32>
    %125 = math.log1p %124 : vector<16x128xf32>
    %126 = arith.addf %115, %125 : vector<16x128xf32>
    %127 = arith.select %118, %120, %126 : vector<16x128xi1>, vector<16x128xf32>
    %cst_27 = arith.constant 0.000000e+00 : f32
    %128 = vector.broadcast %cst_27 : f32 to vector<16x128xf32>
    %129 = arith.subf %128, %127 : vector<16x128xf32>
    %130 = math.exp %129 : vector<16x128xf32>
    %131 = vector.broadcast %87 : vector<1x128xf32> to vector<16x128xf32>
    %132 = arith.mulf %131, %130 : vector<16x128xf32>
    %133 = arith.addf %107, %132 : vector<16x128xf32>
    %cst_28 = arith.constant 2.000000e+00 : f32
    %134 = vector.broadcast %cst_28 : f32 to vector<16x128xf32>
    %135 = arith.mulf %134, %129 : vector<16x128xf32>
    %136 = vector.broadcast %94 : vector<1x128xf32> to vector<16x128xf32>
    %137 = arith.addf %136, %135 : vector<16x128xf32>
    %138 = arith.subf %137, %111 : vector<16x128xf32>
    %cst_29 = arith.constant 1.000000e+00 : f32
    %139 = vector.broadcast %cst_29 : f32 to vector<16x128xf32>
    %140 = vector.broadcast %31 : vector<1x128xf32> to vector<16x128xf32>
    %141 = arith.mulf %140, %0 : vector<16x128xf32>
    %142 = vector.broadcast %63 : vector<1x128xf32> to vector<16x128xf32>
    %143 = arith.addf %141, %142 : vector<16x128xf32>
    %cst_30 = arith.constant 0.000000e+00 : f32
    %144 = vector.broadcast %cst_30 : f32 to vector<16x128xf32>
    %145 = arith.subf %144, %143 : vector<16x128xf32>
    %cst_31 = arith.constant 0.000000e+00 : f32
    %146 = vector.broadcast %cst_31 : f32 to vector<16x128xf32>
    %147 = arith.maximumf %145, %146 : vector<16x128xf32>
    %148 = vector.broadcast %cst_31 : f32 to vector<16x128xf32>
    %149 = arith.subf %145, %148 : vector<16x128xf32>
    %150 = arith.cmpf one, %149, %149 : vector<16x128xf32>
    %151 = vector.broadcast %cst_31 : f32 to vector<16x128xf32>
    %152 = arith.addf %145, %151 : vector<16x128xf32>
    %153 = math.absf %149 : vector<16x128xf32>
    %cst_32 = arith.constant 0.000000e+00 : f32
    %154 = vector.broadcast %cst_32 : f32 to vector<16x128xf32>
    %155 = arith.subf %154, %153 : vector<16x128xf32>
    %156 = math.exp %155 : vector<16x128xf32>
    %157 = math.log1p %156 : vector<16x128xf32>
    %158 = arith.addf %147, %157 : vector<16x128xf32>
    %159 = arith.select %150, %152, %158 : vector<16x128xi1>, vector<16x128xf32>
    %cst_33 = arith.constant 0.000000e+00 : f32
    %160 = vector.broadcast %cst_33 : f32 to vector<16x128xf32>
    %161 = arith.subf %160, %159 : vector<16x128xf32>
    %162 = math.exp %161 : vector<16x128xf32>
    %163 = vector.broadcast %88 : vector<1x128xf32> to vector<16x128xf32>
    %164 = arith.mulf %163, %162 : vector<16x128xf32>
    %165 = arith.addf %133, %164 : vector<16x128xf32>
    %cst_34 = arith.constant 2.000000e+00 : f32
    %166 = vector.broadcast %cst_34 : f32 to vector<16x128xf32>
    %167 = arith.mulf %166, %161 : vector<16x128xf32>
    %168 = vector.broadcast %98 : vector<1x128xf32> to vector<16x128xf32>
    %169 = arith.addf %168, %167 : vector<16x128xf32>
    %170 = arith.subf %169, %143 : vector<16x128xf32>
    %171 = arith.maximumf %138, %170 : vector<16x128xf32>
    %172 = arith.subf %138, %171 : vector<16x128xf32>
    %173 = math.exp %172 : vector<16x128xf32>
    %174 = arith.mulf %139, %173 : vector<16x128xf32>
    %175 = arith.subf %170, %171 : vector<16x128xf32>
    %176 = math.exp %175 : vector<16x128xf32>
    %177 = arith.addf %174, %176 : vector<16x128xf32>
    %178 = vector.broadcast %46 : vector<1x128xf32> to vector<16x128xf32>
    %179 = arith.mulf %178, %0 : vector<16x128xf32>
    %180 = vector.broadcast %64 : vector<1x128xf32> to vector<16x128xf32>
    %181 = arith.addf %179, %180 : vector<16x128xf32>
    %cst_35 = arith.constant 0.000000e+00 : f32
    %182 = vector.broadcast %cst_35 : f32 to vector<16x128xf32>
    %183 = arith.subf %182, %181 : vector<16x128xf32>
    %cst_36 = arith.constant 0.000000e+00 : f32
    %184 = vector.broadcast %cst_36 : f32 to vector<16x128xf32>
    %185 = arith.maximumf %183, %184 : vector<16x128xf32>
    %186 = vector.broadcast %cst_36 : f32 to vector<16x128xf32>
    %187 = arith.subf %183, %186 : vector<16x128xf32>
    %188 = arith.cmpf one, %187, %187 : vector<16x128xf32>
    %189 = vector.broadcast %cst_36 : f32 to vector<16x128xf32>
    %190 = arith.addf %183, %189 : vector<16x128xf32>
    %191 = math.absf %187 : vector<16x128xf32>
    %cst_37 = arith.constant 0.000000e+00 : f32
    %192 = vector.broadcast %cst_37 : f32 to vector<16x128xf32>
    %193 = arith.subf %192, %191 : vector<16x128xf32>
    %194 = math.exp %193 : vector<16x128xf32>
    %195 = math.log1p %194 : vector<16x128xf32>
    %196 = arith.addf %185, %195 : vector<16x128xf32>
    %197 = arith.select %188, %190, %196 : vector<16x128xi1>, vector<16x128xf32>
    %cst_38 = arith.constant 0.000000e+00 : f32
    %198 = vector.broadcast %cst_38 : f32 to vector<16x128xf32>
    %199 = arith.subf %198, %197 : vector<16x128xf32>
    %200 = math.exp %199 : vector<16x128xf32>
    %201 = vector.broadcast %89 : vector<1x128xf32> to vector<16x128xf32>
    %202 = arith.mulf %201, %200 : vector<16x128xf32>
    %203 = arith.addf %165, %202 : vector<16x128xf32>
    %cst_39 = arith.constant 2.000000e+00 : f32
    %204 = vector.broadcast %cst_39 : f32 to vector<16x128xf32>
    %205 = arith.mulf %204, %199 : vector<16x128xf32>
    %206 = vector.broadcast %102 : vector<1x128xf32> to vector<16x128xf32>
    %207 = arith.addf %206, %205 : vector<16x128xf32>
    %208 = arith.subf %207, %181 : vector<16x128xf32>
    %209 = arith.maximumf %171, %208 : vector<16x128xf32>
    %210 = arith.subf %171, %209 : vector<16x128xf32>
    %211 = math.exp %210 : vector<16x128xf32>
    %212 = arith.mulf %177, %211 : vector<16x128xf32>
    %213 = arith.subf %208, %209 : vector<16x128xf32>
    %214 = math.exp %213 : vector<16x128xf32>
    %215 = arith.addf %212, %214 : vector<16x128xf32>
    %216 = vector.broadcast %61 : vector<1x128xf32> to vector<16x128xf32>
    %217 = arith.mulf %216, %0 : vector<16x128xf32>
    %218 = vector.broadcast %65 : vector<1x128xf32> to vector<16x128xf32>
    %219 = arith.addf %217, %218 : vector<16x128xf32>
    %cst_40 = arith.constant 0.000000e+00 : f32
    %220 = vector.broadcast %cst_40 : f32 to vector<16x128xf32>
    %221 = arith.subf %220, %219 : vector<16x128xf32>
    %cst_41 = arith.constant 0.000000e+00 : f32
    %222 = vector.broadcast %cst_41 : f32 to vector<16x128xf32>
    %223 = arith.maximumf %221, %222 : vector<16x128xf32>
    %224 = vector.broadcast %cst_41 : f32 to vector<16x128xf32>
    %225 = arith.subf %221, %224 : vector<16x128xf32>
    %226 = arith.cmpf one, %225, %225 : vector<16x128xf32>
    %227 = vector.broadcast %cst_41 : f32 to vector<16x128xf32>
    %228 = arith.addf %221, %227 : vector<16x128xf32>
    %229 = math.absf %225 : vector<16x128xf32>
    %cst_42 = arith.constant 0.000000e+00 : f32
    %230 = vector.broadcast %cst_42 : f32 to vector<16x128xf32>
    %231 = arith.subf %230, %229 : vector<16x128xf32>
    %232 = math.exp %231 : vector<16x128xf32>
    %233 = math.log1p %232 : vector<16x128xf32>
    %234 = arith.addf %223, %233 : vector<16x128xf32>
    %235 = arith.select %226, %228, %234 : vector<16x128xi1>, vector<16x128xf32>
    %cst_43 = arith.constant 0.000000e+00 : f32
    %236 = vector.broadcast %cst_43 : f32 to vector<16x128xf32>
    %237 = arith.subf %236, %235 : vector<16x128xf32>
    %238 = math.exp %237 : vector<16x128xf32>
    %239 = vector.broadcast %90 : vector<1x128xf32> to vector<16x128xf32>
    %240 = arith.mulf %239, %238 : vector<16x128xf32>
    %241 = arith.addf %203, %240 : vector<16x128xf32>
    %cst_44 = arith.constant 2.000000e+00 : f32
    %242 = vector.broadcast %cst_44 : f32 to vector<16x128xf32>
    %243 = arith.mulf %242, %237 : vector<16x128xf32>
    %244 = vector.broadcast %106 : vector<1x128xf32> to vector<16x128xf32>
    %245 = arith.addf %244, %243 : vector<16x128xf32>
    %246 = arith.subf %245, %219 : vector<16x128xf32>
    %247 = arith.maximumf %209, %246 : vector<16x128xf32>
    %248 = arith.subf %209, %247 : vector<16x128xf32>
    %249 = math.exp %248 : vector<16x128xf32>
    %250 = arith.mulf %215, %249 : vector<16x128xf32>
    %251 = arith.subf %246, %247 : vector<16x128xf32>
    %252 = math.exp %251 : vector<16x128xf32>
    %253 = arith.addf %250, %252 : vector<16x128xf32>
    %254 = math.log %253 : vector<16x128xf32>
    %255 = arith.addf %247, %254 : vector<16x128xf32>
    %cst_45 = arith.constant 0.999998986 : f32
    %256 = vector.broadcast %cst_45 : f32 to vector<16x128xf32>
    %257 = arith.mulf %241, %256 : vector<16x128xf32>
    %cst_46 = arith.constant 5.000000e-07 : f32
    %258 = vector.broadcast %cst_46 : f32 to vector<16x128xf32>
    %259 = arith.addf %257, %258 : vector<16x128xf32>
    %260 = math.log %259 : vector<16x128xf32>
    %cst_47 = arith.constant 1.000000e+00 : f32
    %261 = vector.broadcast %cst_47 : f32 to vector<16x128xf32>
    %262 = arith.subf %261, %259 : vector<16x128xf32>
    %263 = math.log %262 : vector<16x128xf32>
    %264 = arith.subf %260, %263 : vector<16x128xf32>
    %cst_48 = arith.constant -1.00000045E-6 : f32
    %265 = vector.broadcast %cst_48 : f32 to vector<16x128xf32>
    %266 = arith.addf %255, %265 : vector<16x128xf32>
    %267 = arith.addf %260, %263 : vector<16x128xf32>
    %268 = arith.subf %266, %267 : vector<16x128xf32>
    %269 = arith.addf %268, %1 : vector<16x128xf32>
    %c12 = arith.constant 12 : index
    %c0_49 = arith.constant 0 : index
    %270 = vector.load %arg3[%c12, %c0_49] : memref<24x128xf32, #tpu.memory_space<vmem>>, vector<1x128xf32>
    %cst_50 = arith.constant 0.000000e+00 : f32
    %271 = vector.broadcast %cst_50 : f32 to vector<1x128xf32>
    %272 = arith.maximumf %270, %271 : vector<1x128xf32>
    %273 = vector.broadcast %cst_50 : f32 to vector<1x128xf32>
    %274 = arith.subf %270, %273 : vector<1x128xf32>
    %275 = arith.cmpf one, %274, %274 : vector<1x128xf32>
    %276 = vector.broadcast %cst_50 : f32 to vector<1x128xf32>
    %277 = arith.addf %270, %276 : vector<1x128xf32>
    %278 = math.absf %274 : vector<1x128xf32>
    %cst_51 = arith.constant 0.000000e+00 : f32
    %279 = vector.broadcast %cst_51 : f32 to vector<1x128xf32>
    %280 = arith.subf %279, %278 : vector<1x128xf32>
    %281 = math.exp %280 : vector<1x128xf32>
    %282 = math.log1p %281 : vector<1x128xf32>
    %283 = arith.addf %272, %282 : vector<1x128xf32>
    %284 = arith.select %275, %277, %283 : vector<1x128xi1>, vector<1x128xf32>
    %c13 = arith.constant 13 : index
    %c0_52 = arith.constant 0 : index
    %285 = vector.load %arg3[%c13, %c0_52] : memref<24x128xf32, #tpu.memory_space<vmem>>, vector<1x128xf32>
    %cst_53 = arith.constant 0.000000e+00 : f32
    %286 = vector.broadcast %cst_53 : f32 to vector<1x128xf32>
    %287 = arith.maximumf %285, %286 : vector<1x128xf32>
    %288 = vector.broadcast %cst_53 : f32 to vector<1x128xf32>
    %289 = arith.subf %285, %288 : vector<1x128xf32>
    %290 = arith.cmpf one, %289, %289 : vector<1x128xf32>
    %291 = vector.broadcast %cst_53 : f32 to vector<1x128xf32>
    %292 = arith.addf %285, %291 : vector<1x128xf32>
    %293 = math.absf %289 : vector<1x128xf32>
    %cst_54 = arith.constant 0.000000e+00 : f32
    %294 = vector.broadcast %cst_54 : f32 to vector<1x128xf32>
    %295 = arith.subf %294, %293 : vector<1x128xf32>
    %296 = math.exp %295 : vector<1x128xf32>
    %297 = math.log1p %296 : vector<1x128xf32>
    %298 = arith.addf %287, %297 : vector<1x128xf32>
    %299 = arith.select %290, %292, %298 : vector<1x128xi1>, vector<1x128xf32>
    %c14 = arith.constant 14 : index
    %c0_55 = arith.constant 0 : index
    %300 = vector.load %arg3[%c14, %c0_55] : memref<24x128xf32, #tpu.memory_space<vmem>>, vector<1x128xf32>
    %cst_56 = arith.constant 0.000000e+00 : f32
    %301 = vector.broadcast %cst_56 : f32 to vector<1x128xf32>
    %302 = arith.maximumf %300, %301 : vector<1x128xf32>
    %303 = vector.broadcast %cst_56 : f32 to vector<1x128xf32>
    %304 = arith.subf %300, %303 : vector<1x128xf32>
    %305 = arith.cmpf one, %304, %304 : vector<1x128xf32>
    %306 = vector.broadcast %cst_56 : f32 to vector<1x128xf32>
    %307 = arith.addf %300, %306 : vector<1x128xf32>
    %308 = math.absf %304 : vector<1x128xf32>
    %cst_57 = arith.constant 0.000000e+00 : f32
    %309 = vector.broadcast %cst_57 : f32 to vector<1x128xf32>
    %310 = arith.subf %309, %308 : vector<1x128xf32>
    %311 = math.exp %310 : vector<1x128xf32>
    %312 = math.log1p %311 : vector<1x128xf32>
    %313 = arith.addf %302, %312 : vector<1x128xf32>
    %314 = arith.select %305, %307, %313 : vector<1x128xi1>, vector<1x128xf32>
    %c15 = arith.constant 15 : index
    %c0_58 = arith.constant 0 : index
    %315 = vector.load %arg3[%c15, %c0_58] : memref<24x128xf32, #tpu.memory_space<vmem>>, vector<1x128xf32>
    %cst_59 = arith.constant 0.000000e+00 : f32
    %316 = vector.broadcast %cst_59 : f32 to vector<1x128xf32>
    %317 = arith.maximumf %315, %316 : vector<1x128xf32>
    %318 = vector.broadcast %cst_59 : f32 to vector<1x128xf32>
    %319 = arith.subf %315, %318 : vector<1x128xf32>
    %320 = arith.cmpf one, %319, %319 : vector<1x128xf32>
    %321 = vector.broadcast %cst_59 : f32 to vector<1x128xf32>
    %322 = arith.addf %315, %321 : vector<1x128xf32>
    %323 = math.absf %319 : vector<1x128xf32>
    %cst_60 = arith.constant 0.000000e+00 : f32
    %324 = vector.broadcast %cst_60 : f32 to vector<1x128xf32>
    %325 = arith.subf %324, %323 : vector<1x128xf32>
    %326 = math.exp %325 : vector<1x128xf32>
    %327 = math.log1p %326 : vector<1x128xf32>
    %328 = arith.addf %317, %327 : vector<1x128xf32>
    %329 = arith.select %320, %322, %328 : vector<1x128xi1>, vector<1x128xf32>
    %c16 = arith.constant 16 : index
    %c0_61 = arith.constant 0 : index
    %330 = vector.load %arg3[%c16, %c0_61] : memref<24x128xf32, #tpu.memory_space<vmem>>, vector<1x128xf32>
    %c17 = arith.constant 17 : index
    %c0_62 = arith.constant 0 : index
    %331 = vector.load %arg3[%c17, %c0_62] : memref<24x128xf32, #tpu.memory_space<vmem>>, vector<1x128xf32>
    %c18 = arith.constant 18 : index
    %c0_63 = arith.constant 0 : index
    %332 = vector.load %arg3[%c18, %c0_63] : memref<24x128xf32, #tpu.memory_space<vmem>>, vector<1x128xf32>
    %c19 = arith.constant 19 : index
    %c0_64 = arith.constant 0 : index
    %333 = vector.load %arg3[%c19, %c0_64] : memref<24x128xf32, #tpu.memory_space<vmem>>, vector<1x128xf32>
    %c20 = arith.constant 20 : index
    %c0_65 = arith.constant 0 : index
    %334 = vector.load %arg3[%c20, %c0_65] : memref<24x128xf32, #tpu.memory_space<vmem>>, vector<1x128xf32>
    %c21 = arith.constant 21 : index
    %c0_66 = arith.constant 0 : index
    %335 = vector.load %arg3[%c21, %c0_66] : memref<24x128xf32, #tpu.memory_space<vmem>>, vector<1x128xf32>
    %c22 = arith.constant 22 : index
    %c0_67 = arith.constant 0 : index
    %336 = vector.load %arg3[%c22, %c0_67] : memref<24x128xf32, #tpu.memory_space<vmem>>, vector<1x128xf32>
    %c23 = arith.constant 23 : index
    %c0_68 = arith.constant 0 : index
    %337 = vector.load %arg3[%c23, %c0_68] : memref<24x128xf32, #tpu.memory_space<vmem>>, vector<1x128xf32>
    %338 = arith.maximumf %334, %335 : vector<1x128xf32>
    %339 = arith.maximumf %338, %336 : vector<1x128xf32>
    %340 = arith.maximumf %339, %337 : vector<1x128xf32>
    %341 = arith.subf %334, %340 : vector<1x128xf32>
    %342 = math.exp %341 : vector<1x128xf32>
    %343 = arith.subf %335, %340 : vector<1x128xf32>
    %344 = math.exp %343 : vector<1x128xf32>
    %345 = arith.subf %336, %340 : vector<1x128xf32>
    %346 = math.exp %345 : vector<1x128xf32>
    %347 = arith.subf %337, %340 : vector<1x128xf32>
    %348 = math.exp %347 : vector<1x128xf32>
    %349 = arith.addf %342, %344 : vector<1x128xf32>
    %350 = arith.addf %349, %346 : vector<1x128xf32>
    %351 = arith.addf %350, %348 : vector<1x128xf32>
    %cst_69 = arith.constant 1.000000e+00 : f32
    %352 = vector.broadcast %cst_69 : f32 to vector<1x128xf32>
    %353 = arith.divf %352, %351 : vector<1x128xf32>
    %354 = math.log %351 : vector<1x128xf32>
    %355 = arith.mulf %342, %353 : vector<1x128xf32>
    %356 = arith.mulf %344, %353 : vector<1x128xf32>
    %357 = arith.mulf %346, %353 : vector<1x128xf32>
    %358 = arith.mulf %348, %353 : vector<1x128xf32>
    %359 = arith.subf %334, %340 : vector<1x128xf32>
    %360 = arith.subf %359, %354 : vector<1x128xf32>
    %361 = math.log %284 : vector<1x128xf32>
    %362 = arith.addf %360, %361 : vector<1x128xf32>
    %363 = arith.subf %335, %340 : vector<1x128xf32>
    %364 = arith.subf %363, %354 : vector<1x128xf32>
    %365 = math.log %299 : vector<1x128xf32>
    %366 = arith.addf %364, %365 : vector<1x128xf32>
    %367 = arith.subf %336, %340 : vector<1x128xf32>
    %368 = arith.subf %367, %354 : vector<1x128xf32>
    %369 = math.log %314 : vector<1x128xf32>
    %370 = arith.addf %368, %369 : vector<1x128xf32>
    %371 = arith.subf %337, %340 : vector<1x128xf32>
    %372 = arith.subf %371, %354 : vector<1x128xf32>
    %373 = math.log %329 : vector<1x128xf32>
    %374 = arith.addf %372, %373 : vector<1x128xf32>
    %cst_70 = arith.constant 0.000000e+00 : f32
    %375 = vector.broadcast %cst_70 : f32 to vector<16x128xf32>
    %376 = vector.broadcast %284 : vector<1x128xf32> to vector<16x128xf32>
    %377 = arith.mulf %376, %264 : vector<16x128xf32>
    %378 = vector.broadcast %330 : vector<1x128xf32> to vector<16x128xf32>
    %379 = arith.addf %377, %378 : vector<16x128xf32>
    %cst_71 = arith.constant 0.000000e+00 : f32
    %380 = vector.broadcast %cst_71 : f32 to vector<16x128xf32>
    %381 = arith.subf %380, %379 : vector<16x128xf32>
    %cst_72 = arith.constant 0.000000e+00 : f32
    %382 = vector.broadcast %cst_72 : f32 to vector<16x128xf32>
    %383 = arith.maximumf %381, %382 : vector<16x128xf32>
    %384 = vector.broadcast %cst_72 : f32 to vector<16x128xf32>
    %385 = arith.subf %381, %384 : vector<16x128xf32>
    %386 = arith.cmpf one, %385, %385 : vector<16x128xf32>
    %387 = vector.broadcast %cst_72 : f32 to vector<16x128xf32>
    %388 = arith.addf %381, %387 : vector<16x128xf32>
    %389 = math.absf %385 : vector<16x128xf32>
    %cst_73 = arith.constant 0.000000e+00 : f32
    %390 = vector.broadcast %cst_73 : f32 to vector<16x128xf32>
    %391 = arith.subf %390, %389 : vector<16x128xf32>
    %392 = math.exp %391 : vector<16x128xf32>
    %393 = math.log1p %392 : vector<16x128xf32>
    %394 = arith.addf %383, %393 : vector<16x128xf32>
    %395 = arith.select %386, %388, %394 : vector<16x128xi1>, vector<16x128xf32>
    %cst_74 = arith.constant 0.000000e+00 : f32
    %396 = vector.broadcast %cst_74 : f32 to vector<16x128xf32>
    %397 = arith.subf %396, %395 : vector<16x128xf32>
    %398 = math.exp %397 : vector<16x128xf32>
    %399 = vector.broadcast %355 : vector<1x128xf32> to vector<16x128xf32>
    %400 = arith.mulf %399, %398 : vector<16x128xf32>
    %401 = arith.addf %375, %400 : vector<16x128xf32>
    %cst_75 = arith.constant 2.000000e+00 : f32
    %402 = vector.broadcast %cst_75 : f32 to vector<16x128xf32>
    %403 = arith.mulf %402, %397 : vector<16x128xf32>
    %404 = vector.broadcast %362 : vector<1x128xf32> to vector<16x128xf32>
    %405 = arith.addf %404, %403 : vector<16x128xf32>
    %406 = arith.subf %405, %379 : vector<16x128xf32>
    %cst_76 = arith.constant 1.000000e+00 : f32
    %407 = vector.broadcast %cst_76 : f32 to vector<16x128xf32>
    %408 = vector.broadcast %299 : vector<1x128xf32> to vector<16x128xf32>
    %409 = arith.mulf %408, %264 : vector<16x128xf32>
    %410 = vector.broadcast %331 : vector<1x128xf32> to vector<16x128xf32>
    %411 = arith.addf %409, %410 : vector<16x128xf32>
    %cst_77 = arith.constant 0.000000e+00 : f32
    %412 = vector.broadcast %cst_77 : f32 to vector<16x128xf32>
    %413 = arith.subf %412, %411 : vector<16x128xf32>
    %cst_78 = arith.constant 0.000000e+00 : f32
    %414 = vector.broadcast %cst_78 : f32 to vector<16x128xf32>
    %415 = arith.maximumf %413, %414 : vector<16x128xf32>
    %416 = vector.broadcast %cst_78 : f32 to vector<16x128xf32>
    %417 = arith.subf %413, %416 : vector<16x128xf32>
    %418 = arith.cmpf one, %417, %417 : vector<16x128xf32>
    %419 = vector.broadcast %cst_78 : f32 to vector<16x128xf32>
    %420 = arith.addf %413, %419 : vector<16x128xf32>
    %421 = math.absf %417 : vector<16x128xf32>
    %cst_79 = arith.constant 0.000000e+00 : f32
    %422 = vector.broadcast %cst_79 : f32 to vector<16x128xf32>
    %423 = arith.subf %422, %421 : vector<16x128xf32>
    %424 = math.exp %423 : vector<16x128xf32>
    %425 = math.log1p %424 : vector<16x128xf32>
    %426 = arith.addf %415, %425 : vector<16x128xf32>
    %427 = arith.select %418, %420, %426 : vector<16x128xi1>, vector<16x128xf32>
    %cst_80 = arith.constant 0.000000e+00 : f32
    %428 = vector.broadcast %cst_80 : f32 to vector<16x128xf32>
    %429 = arith.subf %428, %427 : vector<16x128xf32>
    %430 = math.exp %429 : vector<16x128xf32>
    %431 = vector.broadcast %356 : vector<1x128xf32> to vector<16x128xf32>
    %432 = arith.mulf %431, %430 : vector<16x128xf32>
    %433 = arith.addf %401, %432 : vector<16x128xf32>
    %cst_81 = arith.constant 2.000000e+00 : f32
    %434 = vector.broadcast %cst_81 : f32 to vector<16x128xf32>
    %435 = arith.mulf %434, %429 : vector<16x128xf32>
    %436 = vector.broadcast %366 : vector<1x128xf32> to vector<16x128xf32>
    %437 = arith.addf %436, %435 : vector<16x128xf32>
    %438 = arith.subf %437, %411 : vector<16x128xf32>
    %439 = arith.maximumf %406, %438 : vector<16x128xf32>
    %440 = arith.subf %406, %439 : vector<16x128xf32>
    %441 = math.exp %440 : vector<16x128xf32>
    %442 = arith.mulf %407, %441 : vector<16x128xf32>
    %443 = arith.subf %438, %439 : vector<16x128xf32>
    %444 = math.exp %443 : vector<16x128xf32>
    %445 = arith.addf %442, %444 : vector<16x128xf32>
    %446 = vector.broadcast %314 : vector<1x128xf32> to vector<16x128xf32>
    %447 = arith.mulf %446, %264 : vector<16x128xf32>
    %448 = vector.broadcast %332 : vector<1x128xf32> to vector<16x128xf32>
    %449 = arith.addf %447, %448 : vector<16x128xf32>
    %cst_82 = arith.constant 0.000000e+00 : f32
    %450 = vector.broadcast %cst_82 : f32 to vector<16x128xf32>
    %451 = arith.subf %450, %449 : vector<16x128xf32>
    %cst_83 = arith.constant 0.000000e+00 : f32
    %452 = vector.broadcast %cst_83 : f32 to vector<16x128xf32>
    %453 = arith.maximumf %451, %452 : vector<16x128xf32>
    %454 = vector.broadcast %cst_83 : f32 to vector<16x128xf32>
    %455 = arith.subf %451, %454 : vector<16x128xf32>
    %456 = arith.cmpf one, %455, %455 : vector<16x128xf32>
    %457 = vector.broadcast %cst_83 : f32 to vector<16x128xf32>
    %458 = arith.addf %451, %457 : vector<16x128xf32>
    %459 = math.absf %455 : vector<16x128xf32>
    %cst_84 = arith.constant 0.000000e+00 : f32
    %460 = vector.broadcast %cst_84 : f32 to vector<16x128xf32>
    %461 = arith.subf %460, %459 : vector<16x128xf32>
    %462 = math.exp %461 : vector<16x128xf32>
    %463 = math.log1p %462 : vector<16x128xf32>
    %464 = arith.addf %453, %463 : vector<16x128xf32>
    %465 = arith.select %456, %458, %464 : vector<16x128xi1>, vector<16x128xf32>
    %cst_85 = arith.constant 0.000000e+00 : f32
    %466 = vector.broadcast %cst_85 : f32 to vector<16x128xf32>
    %467 = arith.subf %466, %465 : vector<16x128xf32>
    %468 = math.exp %467 : vector<16x128xf32>
    %469 = vector.broadcast %357 : vector<1x128xf32> to vector<16x128xf32>
    %470 = arith.mulf %469, %468 : vector<16x128xf32>
    %471 = arith.addf %433, %470 : vector<16x128xf32>
    %cst_86 = arith.constant 2.000000e+00 : f32
    %472 = vector.broadcast %cst_86 : f32 to vector<16x128xf32>
    %473 = arith.mulf %472, %467 : vector<16x128xf32>
    %474 = vector.broadcast %370 : vector<1x128xf32> to vector<16x128xf32>
    %475 = arith.addf %474, %473 : vector<16x128xf32>
    %476 = arith.subf %475, %449 : vector<16x128xf32>
    %477 = arith.maximumf %439, %476 : vector<16x128xf32>
    %478 = arith.subf %439, %477 : vector<16x128xf32>
    %479 = math.exp %478 : vector<16x128xf32>
    %480 = arith.mulf %445, %479 : vector<16x128xf32>
    %481 = arith.subf %476, %477 : vector<16x128xf32>
    %482 = math.exp %481 : vector<16x128xf32>
    %483 = arith.addf %480, %482 : vector<16x128xf32>
    %484 = vector.broadcast %329 : vector<1x128xf32> to vector<16x128xf32>
    %485 = arith.mulf %484, %264 : vector<16x128xf32>
    %486 = vector.broadcast %333 : vector<1x128xf32> to vector<16x128xf32>
    %487 = arith.addf %485, %486 : vector<16x128xf32>
    %cst_87 = arith.constant 0.000000e+00 : f32
    %488 = vector.broadcast %cst_87 : f32 to vector<16x128xf32>
    %489 = arith.subf %488, %487 : vector<16x128xf32>
    %cst_88 = arith.constant 0.000000e+00 : f32
    %490 = vector.broadcast %cst_88 : f32 to vector<16x128xf32>
    %491 = arith.maximumf %489, %490 : vector<16x128xf32>
    %492 = vector.broadcast %cst_88 : f32 to vector<16x128xf32>
    %493 = arith.subf %489, %492 : vector<16x128xf32>
    %494 = arith.cmpf one, %493, %493 : vector<16x128xf32>
    %495 = vector.broadcast %cst_88 : f32 to vector<16x128xf32>
    %496 = arith.addf %489, %495 : vector<16x128xf32>
    %497 = math.absf %493 : vector<16x128xf32>
    %cst_89 = arith.constant 0.000000e+00 : f32
    %498 = vector.broadcast %cst_89 : f32 to vector<16x128xf32>
    %499 = arith.subf %498, %497 : vector<16x128xf32>
    %500 = math.exp %499 : vector<16x128xf32>
    %501 = math.log1p %500 : vector<16x128xf32>
    %502 = arith.addf %491, %501 : vector<16x128xf32>
    %503 = arith.select %494, %496, %502 : vector<16x128xi1>, vector<16x128xf32>
    %cst_90 = arith.constant 0.000000e+00 : f32
    %504 = vector.broadcast %cst_90 : f32 to vector<16x128xf32>
    %505 = arith.subf %504, %503 : vector<16x128xf32>
    %506 = math.exp %505 : vector<16x128xf32>
    %507 = vector.broadcast %358 : vector<1x128xf32> to vector<16x128xf32>
    %508 = arith.mulf %507, %506 : vector<16x128xf32>
    %509 = arith.addf %471, %508 : vector<16x128xf32>
    %cst_91 = arith.constant 2.000000e+00 : f32
    %510 = vector.broadcast %cst_91 : f32 to vector<16x128xf32>
    %511 = arith.mulf %510, %505 : vector<16x128xf32>
    %512 = vector.broadcast %374 : vector<1x128xf32> to vector<16x128xf32>
    %513 = arith.addf %512, %511 : vector<16x128xf32>
    %514 = arith.subf %513, %487 : vector<16x128xf32>
    %515 = arith.maximumf %477, %514 : vector<16x128xf32>
    %516 = arith.subf %477, %515 : vector<16x128xf32>
    %517 = math.exp %516 : vector<16x128xf32>
    %518 = arith.mulf %483, %517 : vector<16x128xf32>
    %519 = arith.subf %514, %515 : vector<16x128xf32>
    %520 = math.exp %519 : vector<16x128xf32>
    %521 = arith.addf %518, %520 : vector<16x128xf32>
    %522 = math.log %521 : vector<16x128xf32>
    %523 = arith.addf %515, %522 : vector<16x128xf32>
    %cst_92 = arith.constant 0.999998986 : f32
    %524 = vector.broadcast %cst_92 : f32 to vector<16x128xf32>
    %525 = arith.mulf %509, %524 : vector<16x128xf32>
    %cst_93 = arith.constant 5.000000e-07 : f32
    %526 = vector.broadcast %cst_93 : f32 to vector<16x128xf32>
    %527 = arith.addf %525, %526 : vector<16x128xf32>
    %528 = math.log %527 : vector<16x128xf32>
    %cst_94 = arith.constant 1.000000e+00 : f32
    %529 = vector.broadcast %cst_94 : f32 to vector<16x128xf32>
    %530 = arith.subf %529, %527 : vector<16x128xf32>
    %531 = math.log %530 : vector<16x128xf32>
    %532 = arith.subf %528, %531 : vector<16x128xf32>
    %cst_95 = arith.constant -1.00000045E-6 : f32
    %533 = vector.broadcast %cst_95 : f32 to vector<16x128xf32>
    %534 = arith.addf %523, %533 : vector<16x128xf32>
    %535 = arith.addf %528, %531 : vector<16x128xf32>
    %536 = arith.subf %534, %535 : vector<16x128xf32>
    %537 = arith.addf %536, %269 : vector<16x128xf32>
    %c0_96 = arith.constant 0 : index
    %c0_97 = arith.constant 0 : index
    %538 = vector.load %arg5[%c0_96, %c0_97] : memref<1x128xf32, #tpu.memory_space<vmem>>, vector<1x128xf32>
    %539 = math.exp %538 : vector<1x128xf32>
    %cst_98 = arith.constant 1.000000e+00 : f32
    %540 = vector.broadcast %cst_98 : f32 to vector<1x128xf32>
    %541 = arith.addf %539, %540 : vector<1x128xf32>
    %cst_99 = arith.constant 1.000000e+00 : f32
    %542 = vector.broadcast %cst_99 : f32 to vector<1x128xf32>
    %543 = arith.subf %541, %542 : vector<1x128xf32>
    %cst_100 = arith.constant 0.000000e+00 : f32
    %544 = vector.broadcast %cst_100 : f32 to vector<1x128xf32>
    %545 = arith.subf %544, %543 : vector<1x128xf32>
    %c0_101 = arith.constant 0 : index
    %c0_102 = arith.constant 0 : index
    %546 = vector.load %arg2[%c0_101, %c0_102] : memref<16x128xf32, #tpu.memory_space<vmem>>, vector<16x128xf32>
    %cst_103 = arith.constant 1.000000e+00 : f32
    %547 = vector.broadcast %cst_103 : f32 to vector<16x128xf32>
    %548 = arith.subf %547, %546 : vector<16x128xf32>
    %549 = arith.divf %546, %548 : vector<16x128xf32>
    %550 = math.log %549 : vector<16x128xf32>
    %c0_104 = arith.constant 0 : index
    %c0_105 = arith.constant 0 : index
    %551 = vector.load %arg4[%c0_104, %c0_105] : memref<1x128xf32, #tpu.memory_space<vmem>>, vector<1x128xf32>
    %552 = vector.broadcast %551 : vector<1x128xf32> to vector<16x128xf32>
    %553 = arith.addf %550, %552 : vector<16x128xf32>
    %cst_106 = arith.constant 0.899999976 : f32
    %554 = vector.broadcast %cst_106 : f32 to vector<16x128xf32>
    %555 = arith.divf %553, %554 : vector<16x128xf32>
    %556 = arith.negf %555 : vector<16x128xf32>
    %557 = math.exp %556 : vector<16x128xf32>
    %cst_107 = arith.constant 1.000000e+00 : f32
    %558 = vector.broadcast %cst_107 : f32 to vector<16x128xf32>
    %559 = arith.addf %558, %557 : vector<16x128xf32>
    %560 = arith.divf %558, %559 : vector<16x128xf32>
    %561 = arith.subf %541, %545 : vector<1x128xf32>
    %562 = vector.broadcast %561 : vector<1x128xf32> to vector<16x128xf32>
    %563 = arith.mulf %562, %560 : vector<16x128xf32>
    %564 = vector.broadcast %545 : vector<1x128xf32> to vector<16x128xf32>
    %565 = arith.addf %563, %564 : vector<16x128xf32>
    %cst_108 = arith.constant 0.000000e+00 : f32
    %cst_109 = arith.constant 1.000000e+00 : f32
    %566 = vector.broadcast %cst_108 : f32 to vector<16x128xf32>
    %567 = arith.maximumf %566, %565 : vector<16x128xf32>
    %568 = vector.broadcast %cst_109 : f32 to vector<16x128xf32>
    %569 = arith.minimumf %568, %567 : vector<16x128xf32>
    %570 = arith.mulf %569, %532 : vector<16x128xf32>
    %c0_110 = arith.constant 0 : index
    %c0_111 = arith.constant 0 : index
    %571 = vector.load %arg6[%c0_110, %c0_111] : memref<16x128xf32, #tpu.memory_space<vmem>>, vector<16x128xf32>
    tpu.vector_store %arg6[%c0_110, %c0_111], %570 {strides = array<i32>} : memref<16x128xf32, #tpu.memory_space<vmem>>, vector<16x128xf32>,
    %c0_112 = arith.constant 0 : index
    %c0_113 = arith.constant 0 : index
    %572 = vector.load %arg7[%c0_112, %c0_113] : memref<16x128xf32, #tpu.memory_space<vmem>>, vector<16x128xf32>
    tpu.vector_store %arg7[%c0_112, %c0_113], %532 {strides = array<i32>} : memref<16x128xf32, #tpu.memory_space<vmem>>, vector<16x128xf32>,
    %c0_114 = arith.constant 0 : index
    %c0_115 = arith.constant 0 : index
    %573 = vector.load %arg8[%c0_114, %c0_115] : memref<16x128xf32, #tpu.memory_space<vmem>>, vector<16x128xf32>
    tpu.vector_store %arg8[%c0_114, %c0_115], %537 {strides = array<i32>} : memref<16x128xf32, #tpu.memory_space<vmem>>, vector<16x128xf32>,
    return
  }
  func.func @transform_0(%arg0: i32) -> (i32, i32) {
    %c0_i32 = arith.constant 0 : i32
    %c0_i32_0 = arith.constant 0 : i32
    return %c0_i32, %arg0 : i32, i32
  }
  func.func @transform_1(%arg0: i32) -> (i32, i32) {
    %c0_i32 = arith.constant 0 : i32
    %c0_i32_0 = arith.constant 0 : i32
    return %c0_i32, %arg0 : i32, i32
  }
  func.func @transform_2(%arg0: i32) -> (i32, i32) {
    %c0_i32 = arith.constant 0 : i32
    %c0_i32_0 = arith.constant 0 : i32
    return %c0_i32, %arg0 : i32, i32
  }
  func.func @transform_3(%arg0: i32) -> (i32, i32) {
    %c0_i32 = arith.constant 0 : i32
    %c0_i32_0 = arith.constant 0 : i32
    return %c0_i32, %arg0 : i32, i32
  }
  func.func @transform_4(%arg0: i32) -> (i32, i32) {
    %c0_i32 = arith.constant 0 : i32
    %c0_i32_0 = arith.constant 0 : i32
    return %c0_i32, %arg0 : i32, i32
  }
  func.func @transform_5(%arg0: i32) -> (i32, i32) {
    %c0_i32 = arith.constant 0 : i32
    %c0_i32_0 = arith.constant 0 : i32
    return %c0_i32, %arg0 : i32, i32
  }
  func.func @transform_6(%arg0: i32) -> (i32, i32) {
    %c0_i32 = arith.constant 0 : i32
    %c0_i32_0 = arith.constant 0 : i32
    return %c0_i32, %arg0 : i32, i32
  }
  func.func @transform_7(%arg0: i32) -> (i32, i32) {
    %c0_i32 = arith.constant 0 : i32
    %c0_i32_0 = arith.constant 0 : i32
    return %c0_i32, %arg0 : i32, i32
  }
}

</mosaic_0001>

<bundles_post_ra>
// kernel: tpu_custom_call.1
= control target key start
LH: loop header
LB: loop body
LE: loop exit
PB: predicated region body
PF: predicated region fallthrough
CT: control target
= control target key end

     0   :  { %s3813_s0 = inlined_call_operand.hbm [shape: f32[16,256], index: 0, kind: input, shape index: {}]   ;;  %s3814_s1 = inlined_call_operand.hbm [shape: f32[16,256], index: 1, kind: input, shape index: {}]   ;;  %s3815_s2 = inlined_call_operand.hbm [shape: f32[24,256], index: 2, kind: input, shape index: {}]   ;;  %s3816_s3 = inlined_call_operand.vmem [shape: f32[1,256], index: 3, kind: input, shape index: {}]   ;;  %s3817_s4 = inlined_call_operand.vmem [shape: f32[1,256], index: 4, kind: input, shape index: {}]   ;;  %s3818_s5 = inlined_call_operand.hbm [shape: f32[16,256], index: 5, kind: output, shape index: {0}]   ;;  %s3819_s6 = inlined_call_operand.hbm [shape: f32[16,256], index: 6, kind: output, shape index: {1}]   ;;  %s3820_s7 = inlined_call_operand.hbm [shape: f32[16,256], index: 7, kind: output, shape index: {2}]  }
   0x1   :  { %3848 = sst [smem:[#allocation31_spill]] %s3813_s0 }
   0x2   :  { %3849 = sst [smem:[#allocation32_spill]] %s3814_s1 }
   0x3   :  { %13 = vsyncpa [#allocation3], 0 }
   0x4   :  { %15 = vsyncpa [#allocation3 + $0x1], 0 }
   0x5   :  { %16 = vsyncpa [#allocation6], 0 }
   0x6   :  { %18 = vsyncpa [#allocation6 + $0x1], 0 }
   0x7   :  { %19 = vsyncpa [#allocation4], 0 }
   0x8   :  { %21 = vsyncpa [#allocation4 + $0x1], 0 }
   0x9   :  { %22 = vsyncpa [#allocation10], 0 }
   0xa   :  { %24 = vsyncpa [#allocation10 + $0x1], 0  ;;  %s2386_s24 = smov 0   ;;  %s2388_s25 = smov 0  }
   0xb   :  { %s2390_s26 = smov 0   ;;  %s2392_s27 = smov 0  }
   0xc LB: > { %3850 = sst [smem:[#allocation16_spill]] %s2328_s26  ;;  %s2407_s28 = sadd.s32 4294967295, %s2332_s27   ;;  %s2332_s27 = sphi %s2392_s27, %s3955_s27   ;;  %s2328_s26 = sphi %s2390_s26, %s3957_s26   ;;  %s2324_s25 = sphi %s2388_s25, %s3959_s25   ;;  %s2320_s24 = sphi %s2386_s24, %s3958_s24  }
   0xd   : > { %s3821_s29 = sadd.s32 4294967294, %s2332_s27   ;;  %s2411_s30 = sadd.s32 1, %s2332_s27  }
   0xe   : > { %3851 = sst [smem:[#allocation17_spill]] %s2411_s30  ;;  %s37_s8 = sadd.s32 1, %s2328_s26 }
   0xf   : > { %s34_s9 = ssub.s32 %s2332_s27, %s2411_s30  ;;  %p44_p0 = scmp.ne.s32.totalorder %s2328_s26, %s2324_s25 }
  0x10   : > { %p35_p1 = scmp.eq.s32.totalorder %s34_s9, 0  ;;  %p45_p2 = scmp.eq.s32.totalorder %s2332_s27, 0 }
  0x11   : > { %p50_p3 = scmp.ne.s32.totalorder %s2324_s25, %s2320_s24  ;;  %p51_p4 = scmp.eq.s32.totalorder %s2407_s28, 0 }
  0x12   : > { %s2423_s10 = scalar_select %p35_p1, %s2328_s26, %s37_s8  }
  0x13   : > { %p46_p5 = por %p45_p2, %p44_p0  ;;  %p2425_p6 = por %p51_p4, %p50_p3 }
  0x14   : > { %3852 = sst [smem:[#allocation18_spill]] %s2423_s10  ;;  %p178_p7 = scmp.eq.s32.totalorder %s2407_s28, 1 }
  0x15   : > { %s3853_s11 = scalar_select %p2425_p6, 1, 0 }
  0x16   : > { %p184_p8 = scmp.eq.s32.totalorder %s3821_s29, 1  ;;  %p1814_p10 = scmp.lt.s32.totalorder %s2332_s27, 2 }
  0x17   : > { %p2434_p11 = por %p178_p7, %p44_p0  ;;  %s2443_s14 = sand.u32 1, %s2328_s26  }
  0x18   : > { %p2438_p12 = por %p184_p8, %p50_p3  ;;  %s2446_s15 = sshll.u32 %s2332_s27, 7 }
  0x19   : > { %s3854_s12 = scalar_select %p2434_p11, 1, 0 }
  0x1a   : > { %s3855_s13 = scalar_select %p2438_p12, 1, 0 }
  0x1b   : > { %s3822_s16 = sshll.u32 %s2443_s14, 4  ;;  %p2449_p13 = pnand %p1814_p10, %p46_p5 }
  0x1c   : > { %3856 = sst [smem:[#allocation19_spill]] %s3855_s13  ;;  %s276_s18 = sand.u32 1, %s2332_s27  }
  0x1d   : > { %s3858_s1 = sld [smem:[#allocation32_spill]]  ;;  %s280_s22 = scalar_lea.vmem [#allocation5], %s3822_s16 }
  0x1e   : > { %s286_s23 = sshll.u32 %s280_s22, 4  ;;  %s2466_s8 = scalar_lea.sflag [#allocation6], %s276_s18  ;;  %s2463_s23 = int_to_ptr.vmem [resolvable:$true] %s286_s23 }
  0x1f   : > { %p2472_p3 = pneg %p2449_p13 }
  0x23   : > { %s2458_s21 = scalar_lea.hbm %s3858_s1, %s2446_s15  ;;  %s2117_s22 = scalar_lea.hbm %s3858_s1, 512 }
  0x24   : > { %s2112_s9 = scalar_lea.hbm %s2458_s21, 256  ;;  %p2118_p7 = scmp.lt.u32.totalorder %s2458_s21, %s3858_s1 }
  0x25   : > { %p2113_p2 = scmp.ne.s32.totalorder %s2458_s21, %s2112_s9  ;;  %p2119_p8 = scmp.lt.u32.totalorder %s2117_s22, %s2112_s9 }
  0x26   : > { %p2121_p9 = scmp.lt.u32.totalorder %s2112_s9, %s2458_s21 }
  0x27   : > { %p2115_p4 = pnand %p2472_p3, %p2113_p2  ;;  %p2120_p10 = por %p2119_p8, %p2118_p7 }
  0x29   : > { %p2116_p5 = pneg %p2115_p4  ;;  %p2122_p0 = por %p2121_p9, %p2120_p10 }
  0x2b   : > { %p2123_p1 = pnand %p2122_p0, %p2116_p5 }
  0x2d   : > { %2126 = shalt.err (!%p2123_p1)
}
  0x2e   : > { %s2127_s18 = scalar_lea.vmem %s2463_s23, 256  ;;  %s2334_s29 = smov [#allocation5]  }
  0x2f   : > { %p2128_p2 = scmp.ne.s32.totalorder %s2463_s23, %s2127_s18  ;;  %s2132_s20 = sshll.u32 %s2334_s29, 4  ;;  %s2133_s20 = int_to_ptr.vmem [resolvable:$false] %s2132_s20 }
  0x30   : > { %s2134_s10 = scalar_lea.vmem %s2133_s20, 512  ;;  %p2135_p11 = scmp.lt.s32.totalorder %s2463_s23, %s2133_s20 }
  0x31   : > { %p2130_p4 = pnand %p2128_p2, %p2472_p3  ;;  %p2136_p6 = scmp.lt.s32.totalorder %s2134_s10, %s2127_s18 }
  0x33   : > { %p2131_p12 = pneg %p2130_p4  ;;  %p2137_p7 = por %p2136_p6, %p2135_p11 }
  0x35   : > { %p2138_p8 = pnand %p2137_p7, %p2131_p12 }
  0x37   : > { %2141 = shalt.err (!%p2138_p8)
}
  0x38   : > { %s3829_s16 = smov 256   ;;  %s3831_s9 = smov 128  }
  0x39   : > { %s3833_s22 = smov 8   ;;  %p3860_p6 = scmp.lt.s32.totalorder %s2332_s27, 3 }
  0x3a   : > { %1800 = dma.hbm_to_vmem [thread:$0]  (!%p2449_p13), %s2458_s21, 256, %s2463_s23, %s2466_s8, %s3829_s16, %s3831_s9, %s3833_s22  }
  0x3b   : > { %p3861_p9 = scmp.ge.s32.totalorder %s2332_s27, 1  ;;  %s3863_s0 = sld [smem:[#allocation31_spill]] }
  0x3c   : > { %s3864_s1 = sshll.u32 %s2443_s14, 4  ;;  %s1780_s13 = smul.u32 24, %s2443_s14 }
  0x3d   : > { %p2503_p11 = pnand %p3861_p9, %p3860_p6  ;;  %s260_s26 = scalar_lea.vmem [#allocation2], %s3864_s1 }
  0x3e   : > { %s266_s30 = sshll.u32 %s260_s26, 4  ;;  %s257_s21 = scalar_lea.sflag [#allocation3], %s2443_s14  ;;  %s2516_s30 = int_to_ptr.vmem [resolvable:$true] %s266_s30 }
  0x3f   : > { %s3862_s18 = scalar_select %p2503_p11, 1, 0 }
  0x41   : > { %s2511_s10 = scalar_lea.hbm %s3863_s0, %s2446_s15  ;;  %s2147_s20 = scalar_lea.hbm %s3863_s0, 512 }
  0x42   : > { %s2142_s23 = scalar_lea.hbm %s2511_s10, 256  ;;  %p2148_p5 = scmp.lt.u32.totalorder %s2511_s10, %s3863_s0 }
  0x43   : > { %p2143_p12 = scmp.ne.s32.totalorder %s2511_s10, %s2142_s23  ;;  %p2149_p10 = scmp.lt.u32.totalorder %s2147_s20, %s2142_s23 }
  0x44   : > { %p2151_p4 = scmp.lt.u32.totalorder %s2142_s23, %s2511_s10 }
  0x45   : > { %p2145_p0 = pnand %p2143_p12, %p2472_p3  ;;  %p2150_p2 = por %p2149_p10, %p2148_p5 }
  0x47   : > { %p2146_p1 = pneg %p2145_p0  ;;  %p2152_p7 = por %p2151_p4, %p2150_p2 }
  0x49   : > { %p2153_p8 = pnand %p2152_p7, %p2146_p1 }
  0x4b   : > { %2156 = shalt.err (!%p2153_p8)
}
  0x4c   : > { %s2157_s1 = scalar_lea.vmem %s2516_s30, 256  ;;  %s2338_s26 = smov [#allocation2]  }
  0x4d   : > { %p2158_p6 = scmp.ne.s32.totalorder %s2516_s30, %s2157_s1  ;;  %s2162_s16 = sshll.u32 %s2338_s26, 4  ;;  %s2163_s16 = int_to_ptr.vmem [resolvable:$false] %s2162_s16 }
  0x4e   : > { %s2164_s9 = scalar_lea.vmem %s2163_s16, 512  ;;  %p2165_p0 = scmp.lt.s32.totalorder %s2516_s30, %s2163_s16 }
  0x4f   : > { %p2160_p9 = pnand %p2158_p6, %p2472_p3  ;;  %p2166_p11 = scmp.lt.s32.totalorder %s2164_s9, %s2157_s1 }
  0x51   : > { %p2161_p12 = pneg %p2160_p9  ;;  %p2167_p5 = por %p2166_p11, %p2165_p0 }
  0x53   : > { %p2168_p10 = pnand %p2167_p5, %p2161_p12 }
  0x55   : > { %2171 = shalt.err (!%p2168_p10)
}
  0x56   : > { %s3865_s22 = smov 8   ;;  %s3866_s23 = smov 128  }
  0x57   : > { %s3867_s29 = smov 256   ;;  %s2549_s1 = scalar_lea.hbm %s3815_s2, %s2446_s15 }
  0x58   : > { %1797 = dma.hbm_to_vmem [thread:$0]  (!%p2449_p13), %s2511_s10, 256, %s2516_s30, %s257_s21, %s3867_s29, %s3866_s23, %s3865_s22  }
  0x59   : > { %s300_s16 = scalar_lea.vmem [#allocation7], %s1780_s13  ;;  %s2172_s0 = scalar_lea.hbm %s2549_s1, 384 }
  0x5a   : > { %s306_s9 = sshll.u32 %s300_s16, 4  ;;  %p2173_p11 = scmp.ne.s32.totalorder %s2549_s1, %s2172_s0  ;;  %s2553_s9 = int_to_ptr.vmem [resolvable:$true] %s306_s9 }
  0x5b   : > { %s2177_s21 = scalar_lea.hbm %s3815_s2, 768  ;;  %p2178_p4 = scmp.lt.u32.totalorder %s2549_s1, %s3815_s2 }
  0x5c   : > { %p2175_p1 = pnand %p2173_p11, %p2472_p3  ;;  %p2179_p7 = scmp.lt.u32.totalorder %s2177_s21, %s2172_s0 }
  0x5d   : > { %p2181_p6 = scmp.lt.u32.totalorder %s2172_s0, %s2549_s1 }
  0x5e   : > { %p2176_p2 = pneg %p2175_p1  ;;  %p2180_p8 = por %p2179_p7, %p2178_p4 }
  0x60   : > { %p2182_p9 = por %p2181_p6, %p2180_p8 }
  0x62   : > { %p2183_p12 = pnand %p2182_p9, %p2176_p2 }
  0x64   : > { %2186 = shalt.err (!%p2183_p12)
}
  0x65   : > { %s2187_s13 = scalar_lea.vmem %s2553_s9, 384  ;;  %s2339_s14 = smov [#allocation7]  }
  0x66   : > { %p2188_p0 = scmp.ne.s32.totalorder %s2553_s9, %s2187_s13  ;;  %s2192_s26 = sshll.u32 %s2339_s14, 4  ;;  %s2193_s26 = int_to_ptr.vmem [resolvable:$false] %s2192_s26 }
  0x67   : > { %s2194_s16 = scalar_lea.vmem %s2193_s26, 768  ;;  %p2195_p11 = scmp.lt.s32.totalorder %s2553_s9, %s2193_s26 }
  0x68   : > { %p2190_p5 = pnand %p2188_p0, %p2472_p3  ;;  %p2196_p1 = scmp.lt.s32.totalorder %s2194_s16, %s2187_s13 }
  0x6a   : > { %p2191_p10 = pneg %p2190_p5  ;;  %p2197_p4 = por %p2196_p1, %p2195_p11 }
  0x6c   : > { %p2198_p7 = pnand %p2197_p4, %p2191_p10 }
  0x6e   : > { %2201 = shalt.err (!%p2198_p7)
}
  0x6f   : > { %1803 = dma.hbm_to_vmem [thread:$0]  (!%p2449_p13), %s2549_s1, 384, %s2553_s9, %s2466_s8, %s3867_s29, %s3866_s23, %s3865_s22  }
  0x70   : > { %p3868_p3 = scmp.ne.s32.totalorder %s3862_s18, 0 }
  0x72   : > { %330 = sbr.rel (%p3868_p3) target bundleno = 449 (0x1c1), region = 40 }
  0x79   : > { %s2583_s0 = sand.u32 1, %s2324_s25   ;;  %p3869_p2 = scmp.ne.s32.totalorder %s3853_s11, 0 }
  0x7a   : > { %s2586_s19 = sshll.u32 %s2583_s0, 4  ;;  %s333_s17 = scalar_lea.sflag [#allocation3], %s2583_s0 }
  0x7b   : > { %s336_s30 = scalar_lea.vmem [#allocation2], %s2586_s19 }
  0x7c   : > { %2303 = dma.done.wait (%p3869_p2), %s333_s17, 256  }
  0x7d   : > { %2305 = vsyncadd (%p3869_p2), %s333_s17, 4294967040  ;;  %s341_s8 = sand.u32 1, %s2407_s28   ;;  %s345_s22 = scalar_lea.vmem [#allocation5], %s2586_s19 }
  0x7e   : > { %s342_s18 = scalar_lea.sflag [#allocation6], %s341_s8 }
  0x7f   : > { %2307 = dma.done.wait (%p3869_p2), %s342_s18, 640  }
  0x80   : > { %2309 = vsyncadd (%p3869_p2), %s342_s18, 4294966656  ;;  %s1781_s23 = smul.u32 24, %s2583_s0  ;;  %v545_v27 = vlaneseq  ;;  %p411_p13 = scmp.lt.s32.totalorder %s2407_s28, 1 }
  0x81   : > { %s3633_s13 = scalar_lea.vmem [#allocation9], %s2586_s19  ;;  %s3668_s14 = scalar_lea.vmem [#allocation8], %s2586_s19 }
  0x82   : > { %s2603_s29 = scalar_lea.vmem [#allocation7], %s1781_s23  ;;  %v546_v35 = vshrl.u32 %v545_v27, 7  ;;  %s3672_s26 = scalar_lea.vmem [#allocation11], %s2586_s19 }
  0x83   : > { %v2606_v0 = vld [vmem:[%s2603_s29] sm:$0x1]  ;;  %v2609_v1 = vld [vmem:[%s2603_s29 + $0x1] sm:$0x1]  ;;  %v2613_v3 = vld [vmem:[%s2603_s29 + $0x2] sm:$0x1] }
  0x84   : > { %v423_v2 = vand.u32 2147483647, %v2606_v0  ;;  %v442_v4 = vand.u32 2147483647, %v2609_v1  ;;  %v2617_v5 = vld [vmem:[%s2603_s29 + $0x3] sm:$0x1]  ;;  %vm421_vm0 = vcmp.ne.f32.partialorder %v2606_v0, %v2606_v0  ;;  %vm440_vm1 = vcmp.ne.f32.partialorder %v2609_v1, %v2609_v1 }
  0x85   : > { %v461_v7 = vand.u32 2147483647, %v2613_v3  ;;  %v480_v9 = vand.u32 2147483647, %v2617_v5  ;;  %v499_v15 = vld [vmem:[%s2603_s29 + $0x8] sm:$0x1]  ;;  %vm459_vm2 = vcmp.ne.f32.partialorder %v2613_v3, %v2613_v3  ;;  %vm478_vm3 = vcmp.ne.f32.partialorder %v2617_v5, %v2617_v5 }
  0x86   : > { %v424_v6 = vsub.f32 0.0, %v423_v2  ;;  %v443_v8 = vsub.f32 0.0, %v442_v4  ;;  %v500_v16 = vld [vmem:[%s2603_s29 + $0x9] sm:$0x1]  ;;  %v501_v18 = vld [vmem:[%s2603_s29 + $0xa] sm:$0x1] }
  0x87   : > { %v462_v11 = vsub.f32 0.0, %v461_v7  ;;  %v481_v13 = vsub.f32 0.0, %v480_v9  ;;  %v503_v19 = vmax.f32 %v499_v15, %v500_v16  ;;  %v502_v20 = vld [vmem:[%s2603_s29 + $0xb] sm:$0x1]  ;;  %v2626_v21 = vld [vmem:[%s2603_s29 + $0xc] sm:$0x1] }
  0x88   : > { %v425_v10 = vmul.f32 1.442695, %v424_v6  ;;  %v444_v12 = vmul.f32 1.442695, %v443_v8  ;;  %v927_v23 = vand.u32 2147483647, %v2626_v21  ;;  %vm925_vm9 = vcmp.ne.f32.partialorder %v2626_v21, %v2626_v21 }
  0x89   : > { %v463_v14 = vmul.f32 1.442695, %v462_v11  ;;  %v482_v17 = vmul.f32 1.442695, %v481_v13  ;;  %v504_v22 = vmax.f32 %v503_v19, %v501_v18  ;;  %v2635_v32 = vld [vmem:[%s2603_s29 + $0xd] sm:$0x1] }
  0x8a   : > { %1854 = vpow2.f32 %v425_v10  ;;  %v928_v25 = vsub.f32 0.0, %v927_v23  ;;  %v946_v42 = vand.u32 2147483647, %v2635_v32  ;;  %v2644_v46 = vsub.s32 0, %v546_v35  ;;  %v2647_v47 = vld [vmem:[%s2603_s29 + $0xe] sm:$0x1] }
  0x8b   : > { %1856 = vpow2.f32 %v444_v12  ;;  %v505_v24 = vmax.f32 %v504_v22, %v502_v20  ;;  %v420_v51 = vmax.f32 %v2606_v0, 0.0  ;;  %v439_v52 = vmax.f32 %v2609_v1, 0.0  ;;  %v2659_v57 = vld [vmem:[%s2603_s29 + $0x14] sm:$0x1]  ;;  %v2665_v61 = vld [vmem:[%s2603_s29 + $0x15] sm:$0x1] }
  0x8c   : > { %1858 = vpow2.f32 %v463_v14  ;;  %v929_v29 = vmul.f32 1.442695, %v928_v25  ;;  %v947_v53 = vsub.f32 0.0, %v946_v42  ;;  %v965_v56 = vand.u32 2147483647, %v2647_v47  ;;  %s3335_s11 = scalar_select %p411_p13, %s2407_s28, 1 }
  0x8d   : > { %1860 = vpow2.f32 %v482_v17  ;;  %v2629_v26 = vsub.f32 %v499_v15, %v505_v24  ;;  %v2631_v28 = vsub.f32 %v500_v16, %v505_v24  ;;  %v2638_v39 = vsub.f32 %v501_v18, %v505_v24  ;;  %v2678_v13 = vld [vmem:[%s2603_s29 + $0xf] sm:$0x1]  ;;  %s3676_s16 = sshll.u32 %s2407_s28, 7  ;;  %s1536_s17 = sshll.u32 %s3633_s13, 4  ;;  %s3686_s17 = int_to_ptr.vmem [resolvable:$true] %s1536_s17 }
  0x8e   : > { %1862 = vpow2.f32 %v929_v29  ;;  %v2650_v50 = vsub.f32 %v502_v20, %v505_v24  ;;  %v458_v60 = vmax.f32 %v2613_v3, 0.0  ;;  %v477_v7 = vmax.f32 %v2617_v5, 0.0  ;;  %v2692_v24 = vld [vmem:[%s2603_s29 + $0x16] sm:$0x1]  ;;  %s416_s10 = scalar_lea.vmem %s3817_s4, %s3335_s11  ;;  %s413_s20 = scalar_lea.vmem %s3816_s3, %s3335_s11 }
  0x8f   : > { %v507_v30 = vmul.f32 1.442695, %v2629_v26  ;;  %v510_v38 = vmul.f32 1.442695, %v2631_v28  ;;  %v513_v49 = vmul.f32 1.442695, %v2638_v39  ;;  %v1007_v18 = vmax.f32 %v2659_v57, %v2665_v61  ;;  %s3693_s11 = scalar_lea.hbm %s3818_s5, %s3676_s16 }
  0x90   : > { %v516_v2 = vmul.f32 1.442695, %v2650_v50  ;;  %v948_v8 = vmul.f32 1.442695, %v947_v53  ;;  %v966_v12 = vsub.f32 0.0, %v965_v56  ;;  %s1521_s19 = sshll.u32 %s3668_s14, 4  ;;  %s3695_s19 = int_to_ptr.vmem [resolvable:$true] %s1521_s19 }
  0x91   : > { %1864 = vpow2.f32 %v507_v30  ;;  %v984_v30 = vand.u32 2147483647, %v2678_v13  ;;  %s3699_s1 = scalar_lea.sflag [#allocation10], %s341_s8  ;;  %s2202_s9 = scalar_lea.vmem %s3686_s17, 256 }
  0x92   : > { %p2203_p8 = scmp.ne.s32.totalorder %s3686_s17, %s2202_s9  ;;  %p3950_p6 = scmp.ne.s32.totalorder %s3854_s12, 0 }
  0x94   : > { %v1855_v31 = vpop.eup %1854  ;;  %p2204_p9 = pnand %p2203_p8, %p3950_p6 }
  0x95   : > { %v1857_v33 = vpop.eup %1856  ;;  %v427_v34 = vadd.f32 1.0, %v1855_v31  ;;  %v430_v43 = vmul.f32 -0.5, %v1855_v31  ;;  %v433_v58 = vand.u32 2147483647, %v1855_v31 }
  0x96   : > { %v1859_v36 = vpop.eup %1858  ;;  %v446_v37 = vadd.f32 1.0, %v1857_v33  ;;  %v449_v44 = vmul.f32 -0.5, %v1857_v33  ;;  %v452_v62 = vand.u32 2147483647, %v1857_v33  ;;  %p2205_p12 = pneg %p2204_p9 }
  0x97   : > { %v2640_v40 = vpop.eup %1860  ;;  %1866 = vlog2.f32 %v427_v34  ;;  %v465_v41 = vadd.f32 1.0, %v1859_v36  ;;  %v468_v48 = vmul.f32 -0.5, %v1859_v36  ;;  %v431_v54 = vadd.f32 1.0, %v430_v43 }
  0x98   : > { %1868 = vlog2.f32 %v446_v37  ;;  %v484_v45 = vadd.f32 1.0, %v2640_v40  ;;  %v487_v55 = vmul.f32 -0.5, %v2640_v40  ;;  %v450_v59 = vadd.f32 1.0, %v449_v44  ;;  %v2668_v4 = vpop.eup %1862 }
  0x99   : > { %1870 = vlog2.f32 %v465_v41  ;;  %v469_v63 = vadd.f32 1.0, %v468_v48  ;;  %v471_v6 = vand.u32 2147483647, %v1859_v36  ;;  %v432_v10 = vmul.f32 %v1855_v31, %v431_v54 }
  0x9a   : > { %1872 = vpow2.f32 %v510_v38  ;;  %v488_v11 = vadd.f32 1.0, %v487_v55  ;;  %vm2680_vm4 = vcmp.lt.f32.partialorder %v433_v58, 0.0004427343  ;;  %v451_v16 = vmul.f32 %v1857_v33, %v450_v59 }
  0x9b   : > { %1874 = vlog2.f32 %v484_v45  ;;  %v2673_v9 = vpop.eup %1864  ;;  %v490_v17 = vand.u32 2147483647, %v2640_v40  ;;  %vm2687_vm5 = vcmp.lt.f32.partialorder %v452_v62, 0.0004427343  ;;  %v470_v23 = vmul.f32 %v1859_v36, %v469_v63  ;;  %v2746_v63 = vld [vmem:[%s2603_s29 + $0x4] ss:$0 sm:$0xff] }
  0x9c   : > { %1876 = vpow2.f32 %v513_v49  ;;  %vm2694_vm6 = vcmp.lt.f32.partialorder %v471_v6, 0.0004427343  ;;  %v489_v35 = vmul.f32 %v2640_v40, %v488_v11  ;;  %v931_v36 = vadd.f32 1.0, %v2668_v4  ;;  %v1006_v49 = vld [vmem:[%s2603_s29 + $0x17] sm:$0x1] }
  0x9d   : > { %1878 = vpow2.f32 %v516_v2  ;;  %vm2707_vm7 = vcmp.lt.f32.partialorder %v490_v17, 0.0004427343  ;;  %v1008_v43 = vmax.f32 %v1007_v18, %v2692_v24  ;;  %v967_v40 = vmul.f32 1.442695, %v966_v12  ;;  %v2753_v6 = vld [vmem:[%s2603_s29 + $0x5] ss:$0 sm:$0xff] }
  0x9e   : > { %1880 = vpow2.f32 %v948_v8  ;;  %v985_v55 = vsub.f32 0.0, %v984_v30 }
  0x9f   : > { %1882 = vlog2.f32 %v931_v36  ;;  %v1009_v2 = vmax.f32 %v1008_v43, %v1006_v49 }
  0xa0   : > { %1884 = vpow2.f32 %v967_v40 }
  0xa1   : > { %v1867_v14 = vpop.eup %1866  ;;  %v2788_v22 = vsub.f32 %v2659_v57, %v1009_v2  ;;  %v2801_v30 = vsub.f32 %v2665_v61, %v1009_v2  ;;  %v937_v57 = vand.u32 2147483647, %v2668_v4  ;;  %v2823_v40 = vsub.f32 %v2692_v24, %v1009_v2 }
  0xa2   : > { %v1869_v19 = vpop.eup %1868  ;;  %v429_v20 = vmul.f32 0.6931472, %v1867_v14 }
  0xa3   : > { %v1871_v25 = vpop.eup %1870  ;;  %v448_v27 = vmul.f32 0.6931472, %v1869_v19  ;;  %3878 = vst [vmem:[#allocation20_spill] sm:$0xff] %v2788_v22  ;;  %3880 = vst [vmem:[#allocation22_spill] sm:$0xff] %v2801_v30  ;;  %v1011_v42 = vmul.f32 1.442695, %v2788_v22 }
  0xa4   : > { %v2699_v31 = vpop.eup %1872  ;;  %v435_v33 = vsel %vm2680_vm4, %v432_v10, %v429_v20  ;;  %v467_v34 = vmul.f32 0.6931472, %v1871_v25  ;;  %v986_v20 = vmul.f32 1.442695, %v985_v55  ;;  %3882 = vst [vmem:[#allocation24_spill] sm:$0xff] %v2823_v40  ;;  %v3893_v22 = vmax.f32 %v2635_v32, 0.0 }
  0xa5   : > { %v1875_v37 = vpop.eup %1874  ;;  %v436_v38 = vadd.f32 %v435_v33, %v420_v51  ;;  %v454_v41 = vsel %vm2687_vm5, %v451_v16, %v448_v27  ;;  %v417_v51 = vld [vmem:[%s336_s30] sm:$0xff]  ;;  %vm2833_vm8 = vcmp.lt.f32.partialorder %v937_v57, 0.0004427343  ;;  %vm944_vm5 = vcmp.ne.f32.partialorder %v2635_v32, %v2635_v32 }
  0xa6   : > { %v455_v44 = vadd.f32 %v454_v41, %v439_v52  ;;  %v473_v45 = vsel %vm2694_vm6, %v470_v23, %v467_v34  ;;  %v486_v48 = vmul.f32 0.6931472, %v1875_v37  ;;  %v518_v52 = vadd.f32 %v2699_v31, %v2673_v9  ;;  %v2725_v56 = vpop.eup %1876  ;;  %v2791_v23 = vld [vmem:[%s2603_s29 + $0x7] ss:$0 sm:$0xff] }
  0xa7   : > { %v2721_v53 = vsel %vm421_vm0, %v2606_v0, %v436_v38  ;;  %v474_v54 = vadd.f32 %v473_v45, %v458_v60  ;;  %v2771_v14 = vpop.eup %1878  ;;  %1886 = vpow2.f32 %v986_v20  ;;  %v924_v20 = vmax.f32 %v2626_v21, 0.0 }
  0xa8   : > { %v2731_v58 = vsel %vm440_vm1, %v2609_v1, %v455_v44  ;;  %v492_v59 = vsel %vm2707_vm7, %v489_v35, %v486_v48  ;;  %v2737_v0 = vrot.slane %v2721_v53, %v2644_v46  ;;  %v519_v11 = vadd.f32 %v2725_v56, %v518_v52  ;;  %v2782_v18 = vpop.eup %1880 }
  0xa9   : > { %v2743_v60 = vsel %vm459_vm2, %v2613_v3, %v474_v54  ;;  %v493_v62 = vadd.f32 %v492_v59, %v477_v7  ;;  %v2750_v1 = vrot.slane %v2731_v58, %v2644_v46  ;;  %v2767_v7 = vld [vmem:[%s2603_s29 + $0x6] ss:$0 sm:$0xff]  ;;  %v950_v38 = vadd.f32 1.0, %v2782_v18  ;;  %v1883_v43 = vpop.eup %1882 }
  0xaa   : > { %v549_v8 = vmul.f32 %v2737_v0, %v417_v51  ;;  %v2758_v10 = vrot.slane %v2743_v60, %v2644_v46  ;;  %v2804_v33 = vadd.f32 %v2771_v14, %v519_v11  ;;  %v1014_v48 = vmul.f32 1.442695, %v2801_v30 }
  0xab   : > { %v2764_v3 = vsel %vm478_vm3, %v2617_v5, %v493_v62  ;;  %v623_v12 = vmul.f32 %v2750_v1, %v417_v51  ;;  %v934_v5 = vmul.f32 -0.5, %v2668_v4  ;;  %v2829_v52 = vsub.f32 %v1006_v49, %v1009_v2 }
  0xac   : > { %v2774_v15 = vadd.f32 %v2746_v63, %v549_v8  ;;  %v713_v16 = vmul.f32 %v2758_v10, %v417_v51  ;;  %v2779_v17 = vrot.slane %v2764_v3, %v2644_v46  ;;  %1888 = vrcp.f32 %v2804_v33 }
  0xad   : > { %v2785_v19 = vadd.f32 %v2753_v6, %v623_v12  ;;  %v935_v37 = vadd.f32 1.0, %v934_v5  ;;  %3883 = vst [vmem:[#allocation25_spill] sm:$0xff] %v2829_v52  ;;  %1890 = vlog2.f32 %v950_v38  ;;  %v933_v12 = vmul.f32 0.6931472, %v1883_v43  ;;  %v2838_v5 = vpop.eup %1884  ;;  %v2851_v43 = vld [vmem:[%s336_s30 + $0x8] sm:$0xff] }
  0xae   : > { %v2794_v25 = vsub.f32 0.0, %v2774_v15  ;;  %v2797_v27 = vadd.f32 %v2767_v7, %v713_v16  ;;  %v805_v29 = vmul.f32 %v2779_v17, %v417_v51  ;;  %1892 = vpow2.f32 %v1011_v42 }
  0xaf   : > { %v2807_v34 = vsub.f32 0.0, %v2785_v19  ;;  %v936_v62 = vmul.f32 %v2668_v4, %v935_v37  ;;  %1894 = vpow2.f32 %v1014_v48  ;;  %v1017_v16 = vmul.f32 1.442695, %v2823_v40 }
  0xb0   : > { %3879 = vst [vmem:[#allocation21_spill] sm:$0xff] %v2797_v27  ;;  %v565_v35 = vand.u32 2147483647, %v2794_v25  ;;  %v2812_v36 = vsub.f32 0.0, %v2797_v27  ;;  %v2817_v61 = vadd.f32 %v2791_v23, %v805_v29  ;;  %v953_v4 = vmul.f32 -0.5, %v2782_v18 }
  0xb1   : > { %v639_v41 = vand.u32 2147483647, %v2807_v34  ;;  %v939_v57 = vsel %vm2833_vm8, %v936_v62, %v933_v12  ;;  %v969_v37 = vadd.f32 1.0, %v2838_v5  ;;  %v2846_v38 = vpop.eup %1886  ;;  %v956_v42 = vand.u32 2147483647, %v2782_v18 }
  0xb2   : > { %3881 = vst [vmem:[#allocation23_spill] sm:$0xff] %v2817_v61  ;;  %v567_v44 = vsub.f32 0.0, %v565_v35  ;;  %v729_v45 = vand.u32 2147483647, %v2812_v36  ;;  %v2827_v54 = vsub.f32 0.0, %v2817_v61  ;;  %vm561_vm11 = vcmp.ne.f32.partialorder %v2794_v25, %v2794_v25 }
  0xb3   : > { %v641_v51 = vsub.f32 0.0, %v639_v41  ;;  %v1020_v35 = vmul.f32 1.442695, %v2829_v52  ;;  %v954_v41 = vadd.f32 1.0, %v953_v4  ;;  %vm2867_vm10 = vcmp.lt.f32.partialorder %v956_v42, 0.0004427343 }
  0xb4   : > { %v569_v55 = vmul.f32 1.442695, %v567_v44  ;;  %v731_v59 = vsub.f32 0.0, %v729_v45  ;;  %v821_v11 = vand.u32 2147483647, %v2827_v54  ;;  %v940_v44 = vadd.f32 %v939_v57, %v924_v20 }
  0xb5   : > { %v643_v8 = vmul.f32 1.442695, %v641_v51  ;;  %v972_v51 = vmul.f32 -0.5, %v2838_v5  ;;  %v955_v24 = vmul.f32 %v2782_v18, %v954_v41  ;;  %v975_v18 = vand.u32 2147483647, %v2838_v5 }
  0xb6   : > { %1896 = vpow2.f32 %v569_v55  ;;  %v733_v49 = vmul.f32 1.442695, %v731_v59  ;;  %v823_v2 = vsub.f32 0.0, %v821_v11  ;;  %v2853_v45 = vpop.eup %1888  ;;  %vm635_vm12 = vcmp.ne.f32.partialorder %v2807_v34, %v2807_v34 }
  0xb7   : > { %1898 = vpow2.f32 %v643_v8  ;;  %v1891_v55 = vpop.eup %1890  ;;  %v550_v8 = vmul.f32 %v2737_v0, %v2851_v43  ;;  %v2881_v0 = vsel %vm925_vm9, %v2626_v21, %v940_v44  ;;  %v2888_v57 = vmul.f32 %v2853_v45, %v2673_v9 }
  0xb8   : > { %1900 = vpow2.f32 %v733_v49  ;;  %v825_v29 = vmul.f32 1.442695, %v823_v2  ;;  %v2863_v11 = vpop.eup %1892  ;;  %v624_v49 = vmul.f32 %v2750_v1, %v2851_v43  ;;  %v2893_v42 = vmul.f32 %v2853_v45, %v2699_v31 }
  0xb9   : > { %1902 = vpow2.f32 %v1017_v16  ;;  %3886 = vst [vmem:[#allocation26_spill] sm:$0xff] %v2863_v11  ;;  %v2873_v2 = vpop.eup %1894  ;;  %v2897_v21 = vmul.f32 %v2853_v45, %v2725_v56  ;;  %v2901_v62 = vadd.f32 %v2746_v63, %v550_v8  ;;  %v988_v1 = vadd.f32 1.0, %v2846_v38 }
  0xba   : > { %1904 = vpow2.f32 %v825_v29  ;;  %3889 = vst [vmem:[#allocation27_spill] sm:$0xff] %v2873_v2  ;;  %v1022_v56 = vadd.f32 %v2873_v2, %v2863_v11  ;;  %v714_v63 = vmul.f32 %v2758_v10, %v2851_v43  ;;  %vm725_vm13 = vcmp.ne.f32.partialorder %v2812_v36, %v2812_v36 }
  0xbb   : > { %1906 = vpow2.f32 %v1020_v35  ;;  %v952_v35 = vmul.f32 0.6931472, %v1891_v55  ;;  %v2906_v55 = vadd.f32 %v2753_v6, %v624_v49  ;;  %v2924_v48 = vsub.f32 0.0, %v2901_v62 }
  0xbc   : > { %1908 = vlog2.f32 %v969_v37  ;;  %v973_v37 = vadd.f32 1.0, %v972_v51  ;;  %v991_v51 = vmul.f32 -0.5, %v2846_v38  ;;  %vm817_vm14 = vcmp.ne.f32.partialorder %v2827_v54, %v2827_v54 }
  0xbd   : > { %v958_v12 = vsel %vm2867_vm10, %v955_v24, %v952_v35  ;;  %vm2967_vm15 = vcmp.lt.f32.partialorder %v975_v18, 0.0004427343  ;;  %vm963_vm6 = vcmp.ne.f32.partialorder %v2647_v47, %v2647_v47  ;;  %vm982_vm7 = vcmp.ne.f32.partialorder %v2678_v13, %v2678_v13 }
  0xbe   : > { %v2920_v6 = vmul.f32 %v2838_v5, %v973_v37  ;;  %v992_v40 = vadd.f32 1.0, %v991_v51  ;;  %v994_v5 = vand.u32 2147483647, %v2846_v38  ;;  %vm562_vm8 = vcmp.ne.f32.partialorder %v2924_v48, %v2924_v48 }
  0xc0   : > { %v2884_v29 = vpop.eup %1896  ;;  %vm2983_vm3 = vcmp.lt.f32.partialorder %v994_v5, 0.0004427343 }
  0xc1   : > { %v1899_v41 = vpop.eup %1898  ;;  %v573_v44 = vadd.f32 1.0, %v2884_v29  ;;  %v576_v4 = vmul.f32 -0.5, %v2884_v29  ;;  %v579_v37 = vand.u32 2147483647, %v2884_v29 }
  0xc2   : > { %v1901_v9 = vpop.eup %1900  ;;  %v647_v59 = vadd.f32 1.0, %v1899_v41  ;;  %v650_v49 = vmul.f32 -0.5, %v1899_v41 }
  0xc3   : > { %v2908_v31 = vpop.eup %1902  ;;  %1910 = vlog2.f32 %v573_v44  ;;  %v737_v20 = vadd.f32 1.0, %v1901_v9  ;;  %v740_v10 = vmul.f32 -0.5, %v1901_v9  ;;  %v577_v35 = vadd.f32 1.0, %v576_v4 }
  0xc4   : > { %3890 = vst [vmem:[#allocation28_spill] sm:$0xff] %v2908_v31  ;;  %v2914_v8 = vpop.eup %1904  ;;  %1912 = vlog2.f32 %v647_v59  ;;  %v2929_v59 = vsub.f32 0.0, %v2906_v55  ;;  %v1023_v24 = vadd.f32 %v2908_v31, %v1022_v56  ;;  %v743_v30 = vand.u32 2147483647, %v1901_v9 }
  0xc5   : > { %1914 = vlog2.f32 %v737_v20  ;;  %v829_v44 = vadd.f32 1.0, %v2914_v8  ;;  %v2926_v52 = vpop.eup %1906  ;;  %v2934_v20 = vadd.f32 %v2767_v7, %v714_v63  ;;  %v832_v51 = vmul.f32 -0.5, %v2914_v8 }
  0xc6   : > { %3891 = vst [vmem:[#allocation29_spill] sm:$0xff] %v2926_v52  ;;  %1916 = vlog2.f32 %v988_v1  ;;  %v1909_v16 = vpop.eup %1908  ;;  %v653_v1 = vand.u32 2147483647, %v1899_v41  ;;  %v2944_v56 = vadd.f32 %v958_v12, %v3893_v22  ;;  %v566_v7 = vand.u32 2147483647, %v2924_v48 }
  0xc7   : > { %1918 = vlog2.f32 %v829_v44  ;;  %3892 = vst [vmem:[#allocation30_spill] sm:$0xff] %v2934_v20  ;;  %v651_v44 = vadd.f32 1.0, %v650_v49  ;;  %v741_v4 = vadd.f32 1.0, %v740_v10  ;;  %v2949_v63 = vmul.f32 0.6931472, %v1909_v16 }
  0xc8   : > { %v2952_v31 = vmul.f32 %v2846_v38, %v992_v40  ;;  %v640_v2 = vand.u32 2147483647, %v2929_v59  ;;  %v835_v49 = vand.u32 2147483647, %v2914_v8  ;;  %v2957_v11 = vadd.f32 %v2926_v52, %v1023_v24 }
  0xc9   : > { %v2960_v22 = vsub.f32 0.0, %v2934_v20  ;;  %v806_v12 = vmul.f32 %v2779_v17, %v2851_v43  ;;  %v578_v10 = vmul.f32 %v2884_v29, %v577_v35  ;;  %v833_v40 = vadd.f32 1.0, %v832_v51 }
  0xca   : > { %v568_v16 = vsub.f32 0.0, %v566_v7  ;;  %v642_v61 = vsub.f32 0.0, %v640_v2  ;;  %vm2971_vm0 = vcmp.lt.f32.partialorder %v579_v37, 0.0004427343  ;;  %v652_v20 = vmul.f32 %v1899_v41, %v651_v44 }
  0xcb   : > { %vm2975_vm1 = vcmp.lt.f32.partialorder %v653_v1, 0.0004427343  ;;  %vm2979_vm2 = vcmp.lt.f32.partialorder %v743_v30, 0.0004427343  ;;  %v742_v35 = vmul.f32 %v1901_v9, %v741_v4  ;;  %vm2987_vm4 = vcmp.lt.f32.partialorder %v835_v49, 0.0004427343 }
  0xcc   : > { %v571_v2 = vmul.f32 1.442695, %v568_v16  ;;  %v645_v37 = vmul.f32 1.442695, %v642_v61  ;;  %v730_v30 = vand.u32 2147483647, %v2960_v22  ;;  %v2995_v1 = vadd.f32 %v2791_v23, %v806_v12 }
  0xcd   : > { %v1911_v24 = vpop.eup %1910  ;;  %v834_v61 = vmul.f32 %v2914_v8, %v833_v40  ;;  %v3906_v49 = vmax.f32 %v2794_v25, 0.0  ;;  %v3907_v23 = vmax.f32 %v2807_v34, 0.0  ;;  %v3908_v40 = vmax.f32 %v2812_v36, 0.0 }
  0xce   : > { %v1913_v18 = vpop.eup %1912  ;;  %v575_v29 = vmul.f32 0.6931472, %v1911_v24  ;;  %1920 = vpow2.f32 %v571_v2  ;;  %vm636_vm9 = vcmp.ne.f32.partialorder %v2929_v59, %v2929_v59 }
  0xcf   : > { %v1915_v7 = vpop.eup %1914  ;;  %v649_v27 = vmul.f32 0.6931472, %v1913_v18  ;;  %1922 = vpow2.f32 %v645_v37  ;;  %v732_v18 = vsub.f32 0.0, %v730_v30 }
  0xd0   : > { %v1917_v9 = vpop.eup %1916  ;;  %v581_v5 = vsel %vm2971_vm0, %v578_v10, %v575_v29  ;;  %v739_v44 = vmul.f32 0.6931472, %v1915_v7  ;;  %v3009_v29 = vsub.f32 0.0, %v2995_v1  ;;  %1924 = vlog2.f32 %v2804_v33 }
  0xd1   : > { %v1919_v4 = vpop.eup %1918  ;;  %v591_v16 = vadd.f32 %v581_v5, %v3906_v49  ;;  %v655_v24 = vsel %vm2975_vm1, %v652_v20, %v649_v27  ;;  %v735_v20 = vmul.f32 1.442695, %v732_v18  ;;  %v990_v2 = vmul.f32 0.6931472, %v1917_v9 }
  0xd2   : > { %v665_v12 = vadd.f32 %v655_v24, %v3907_v23  ;;  %v745_v52 = vsel %vm2979_vm2, %v742_v35, %v739_v44  ;;  %v831_v10 = vmul.f32 0.6931472, %v1919_v4  ;;  %v3909_v7 = vmax.f32 %v2827_v54, 0.0 }
  0xd3   : > { %v593_v8 = vsel %vm561_vm11, %v2794_v25, %v591_v16  ;;  %v755_v27 = vadd.f32 %v745_v52, %v3908_v40  ;;  %1926 = vpow2.f32 %v735_v20  ;;  %v822_v41 = vand.u32 2147483647, %v3009_v29 }
  0xd4   : > { %v595_v17 = vsub.f32 0.0, %v593_v8  ;;  %v667_v43 = vsel %vm635_vm12, %v2807_v34, %v665_v12  ;;  %v837_v35 = vsel %vm2987_vm4, %v834_v61, %v831_v10  ;;  %1928 = vrcp.f32 %v2957_v11 }
  0xd5   : > { %v669_v25 = vsub.f32 0.0, %v667_v43  ;;  %v3030_v37 = vsel %vm725_vm13, %v2812_v36, %v755_v27  ;;  %v847_v33 = vadd.f32 %v837_v35, %v3909_v7  ;;  %v977_v5 = vsel %vm2967_vm15, %v2920_v6, %v2949_v63 }
  0xd6   : > { %v597_v30 = vmul.f32 1.442695, %v595_v17  ;;  %v759_v34 = vsub.f32 0.0, %v3030_v37  ;;  %1930 = vlog2.f32 %v2721_v53  ;;  %v824_v4 = vsub.f32 0.0, %v822_v41 }
  0xd7   : > { %v671_v9 = vmul.f32 1.442695, %v669_v25  ;;  %v3043_v36 = vsel %vm817_vm14, %v2827_v54, %v847_v33  ;;  %v528_v49 = vmul.f32 %v2853_v45, %v2771_v14  ;;  %v3057_v54 = vrot.slane %v2888_v57, %v2644_v46 }
  0xd8   : > { %1932 = vpow2.f32 %v597_v30  ;;  %v761_v44 = vmul.f32 1.442695, %v759_v34  ;;  %v851_v61 = vsub.f32 0.0, %v3043_v36  ;;  %v996_v6 = vsel %vm2983_vm3, %v2952_v31, %v990_v2  ;;  %v1921_v53 = vpop.eup %1920 }
  0xd9   : > { %1934 = vpow2.f32 %v671_v9  ;;  %v3069_v14 = vsel %vm944_vm5, %v2635_v32, %v2944_v56  ;;  %v3910_v45 = vmax.f32 %v2647_v47, 0.0  ;;  %v3073_v38 = vpop.eup %1922  ;;  %v3077_v31 = vrot.slane %v2893_v42, %v2644_v46 }
  0xda   : > { %1936 = vpow2.f32 %v761_v44  ;;  %v853_v63 = vmul.f32 1.442695, %v851_v61  ;;  %v582_v51 = vadd.f32 1.0, %v1921_v53  ;;  %v827_v16 = vmul.f32 1.442695, %v824_v4  ;;  %v1925_v23 = vpop.eup %1924 }
  0xdb   : > { %v978_v57 = vadd.f32 %v977_v5, %v3910_v45  ;;  %1938 = vlog2.f32 %v2731_v58  ;;  %v3082_v24 = vrot.slane %v2897_v21, %v2644_v46  ;;  %v3911_v32 = vmax.f32 %v2678_v13, 0.0 }
  0xdc   : > { %1940 = vpow2.f32 %v853_v63  ;;  %v656_v18 = vadd.f32 1.0, %v3073_v38  ;;  %v3088_v12 = vrot.slane %v528_v49, %v2644_v46  ;;  %v3092_v42 = vrot.slane %v2881_v0, %v2644_v46 }
  0xdd   : > { %v997_v56 = vadd.f32 %v996_v6, %v3911_v32  ;;  %v3096_v58 = vrot.slane %v3069_v14, %v2644_v46  ;;  %1942 = vlog2.f32 %v582_v51  ;;  %v3102_v21 = vsel %vm963_vm6, %v2647_v47, %v978_v57  ;;  %v3106_v8 = vpop.eup %1926 }
  0xde   : > { %v585_v52 = vmul.f32 -0.5, %v1921_v53  ;;  %1944 = vlog2.f32 %v656_v18  ;;  %v3104_v10 = vmul.f32 0.6931472, %v1925_v23  ;;  %v560_v40 = vmax.f32 %v2924_v48, 0.0  ;;  %v3111_v43 = vpop.eup %1928 }
  0xdf   : > { %v634_v27 = vmax.f32 %v2929_v59, 0.0  ;;  %v659_v20 = vmul.f32 -0.5, %v3073_v38  ;;  %1946 = vpow2.f32 %v827_v16  ;;  %v3117_v47 = vsel %vm982_vm7, %v2678_v13, %v997_v56 }
  0xe0   : > { %v724_v35 = vmax.f32 %v2960_v22, 0.0  ;;  %v746_v2 = vadd.f32 1.0, %v3106_v8  ;;  %v609_v7 = vmul.f32 2.0, %v595_v17  ;;  %v1931_v33 = vpop.eup %1930  ;;  %v588_v30 = vand.u32 2147483647, %v1921_v53 }
  0xe1   : > { %v529_v41 = vsub.f32 %v2629_v26, %v3104_v10  ;;  %1948 = vlog2.f32 %v2743_v60  ;;  %v3124_v9 = vmul.f32 2.0, %v669_v25  ;;  %v586_v13 = vadd.f32 1.0, %v585_v52 }
  0xe2   : > { %v1933_v5 = vpop.eup %1932  ;;  %v662_v44 = vand.u32 2147483647, %v3073_v38  ;;  %1950 = vlog2.f32 %v746_v2  ;;  %v531_v4 = vmul.f32 0.6931472, %v1931_v33  ;;  %v660_v26 = vadd.f32 1.0, %v659_v20 }
  0xe3   : > { %v1935_v49 = vpop.eup %1934  ;;  %v605_v17 = vmul.f32 %v1933_v5, %v3057_v54  ;;  %v749_v60 = vmul.f32 -0.5, %v3106_v8  ;;  %1952 = vlog2.f32 %v2764_v3  ;;  %v533_v45 = vsub.f32 %v2631_v28, %v3104_v10 }
  0xe4   : > { %v1937_v25 = vpop.eup %1936  ;;  %v679_v6 = vmul.f32 %v1935_v49, %v3077_v31  ;;  %v532_v63 = vadd.f32 %v531_v4, %v529_v41  ;;  %v3139_v57 = vmul.f32 2.0, %v759_v34  ;;  %vm3142_vm10 = vcmp.lt.f32.partialorder %v588_v30, 0.0004427343 }
  0xe5   : > { %v1939_v51 = vpop.eup %1938  ;;  %v769_v16 = vmul.f32 %v1937_v25, %v3082_v24  ;;  %v752_v3 = vand.u32 2147483647, %v3106_v8  ;;  %v3149_v56 = vmul.f32 2.0, %v851_v61  ;;  %v587_v28 = vmul.f32 %v1921_v53, %v586_v13 }
  0xe6   : > { %v1941_v18 = vpop.eup %1940  ;;  %v681_v23 = vadd.f32 %v679_v6, %v605_v17  ;;  %v535_v52 = vmul.f32 0.6931472, %v1939_v51  ;;  %v614_v37 = vrot.slane %v532_v63, %v2644_v46  ;;  %v661_v2 = vmul.f32 %v3073_v38, %v660_v26 }
  0xe7   : > { %v1943_v34 = vpop.eup %1942  ;;  %v861_v20 = vmul.f32 %v1941_v18, %v3088_v12  ;;  %vm3154_vm11 = vcmp.lt.f32.partialorder %v662_v44, 0.0004427343  ;;  %vm726_vm12 = vcmp.ne.f32.partialorder %v2960_v22, %v2960_v22  ;;  %v750_v36 = vadd.f32 1.0, %v749_v60 }
  0xe8   : > { %v1945_v61 = vpop.eup %1944  ;;  %v771_v30 = vadd.f32 %v769_v16, %v681_v23  ;;  %v584_v41 = vmul.f32 0.6931472, %v1943_v34  ;;  %v536_v53 = vadd.f32 %v535_v52, %v533_v45  ;;  %v615_v5 = vadd.f32 %v614_v37, %v609_v7 }
  0xe9   : > { %v1947_v13 = vpop.eup %1946  ;;  %v658_v4 = vmul.f32 0.6931472, %v1945_v61  ;;  %vm3160_vm13 = vcmp.lt.f32.partialorder %v752_v3, 0.0004427343  ;;  %v537_v38 = vsub.f32 %v2638_v39, %v3104_v10  ;;  %v541_v44 = vsub.f32 %v2650_v50, %v3104_v10 }
  0xea   : > { %v863_v17 = vadd.f32 %v861_v20, %v771_v30  ;;  %v590_v26 = vsel %vm3142_vm10, %v587_v28, %v584_v41  ;;  %v838_v60 = vadd.f32 1.0, %v1947_v13  ;;  %v841_v25 = vmul.f32 -0.5, %v1947_v13 }
  0xeb   : > { %v1949_v6 = vpop.eup %1948  ;;  %v592_v7 = vadd.f32 %v590_v26, %v560_v40  ;;  %v664_v63 = vsel %vm3154_vm11, %v661_v2, %v658_v4  ;;  %v751_v45 = vmul.f32 %v3106_v8, %v750_v36  ;;  %v3174_v51 = vsub.f32 %v615_v5, %v2774_v15 }
  0xec   : > { %v1951_v39 = vpop.eup %1950  ;;  %v899_v16 = vmul.f32 0.999999, %v863_v17  ;;  %v666_v50 = vadd.f32 %v664_v63, %v634_v27  ;;  %1954 = vlog2.f32 %v838_v60  ;;  %v842_v10 = vadd.f32 1.0, %v841_v25 }
  0xed   : > { %v1953_v32 = vpop.eup %1952  ;;  %v594_v40 = vsel %vm562_vm8, %v2924_v48, %v592_v7  ;;  %v748_v3 = vmul.f32 0.6931472, %v1951_v39  ;;  %v844_v18 = vand.u32 2147483647, %v1947_v13  ;;  %v539_v23 = vmul.f32 0.6931472, %v1949_v6 }
  0xee   : > { %v901_v8 = vadd.f32 5e-07, %v899_v16  ;;  %v596_v28 = vsub.f32 0.0, %v594_v40  ;;  %v668_v15 = vsel %vm636_vm9, %v2929_v59, %v666_v50  ;;  %v843_v52 = vmul.f32 %v1947_v13, %v842_v10  ;;  %v3920_v39 = vld [vmem:[#allocation21_spill] sm:$0xff] }
  0xef   : > { %v670_v27 = vsub.f32 0.0, %v668_v15  ;;  %v754_v34 = vsel %vm3160_vm13, %v751_v45, %v748_v3  ;;  %v540_v20 = vadd.f32 %v539_v23, %v537_v38  ;;  %v543_v2 = vmul.f32 0.6931472, %v1953_v32 }
  0xf0   : > { %1956 = vlog2.f32 %v901_v8  ;;  %v907_v33 = vsub.f32 1.0, %v901_v8  ;;  %v599_v48 = vmul.f32 1.442695, %v596_v28  ;;  %v756_v36 = vadd.f32 %v754_v34, %v724_v35 }
  0xf1   : > { %v673_v61 = vmul.f32 1.442695, %v670_v27  ;;  %v544_v30 = vadd.f32 %v543_v2, %v541_v44  ;;  %v610_v41 = vmul.f32 2.0, %v596_v28  ;;  %v684_v5 = vmul.f32 2.0, %v670_v27 }
  0xf2   : > { %1958 = vlog2.f32 %v907_v33  ;;  %v758_v59 = vsel %vm726_vm12, %v2960_v22, %v756_v36  ;;  %v688_v13 = vrot.slane %v536_v53, %v2644_v46  ;;  %v778_v4 = vrot.slane %v540_v20, %v2644_v46 }
  0xf3   : > { %1960 = vpow2.f32 %v599_v48  ;;  %v760_v49 = vsub.f32 0.0, %v758_v59  ;;  %v616_v38 = vadd.f32 %v614_v37, %v610_v41  ;;  %v3197_v17 = vrot.slane %v544_v30, %v2644_v46  ;;  %v3245_v59 = vld [vmem:[%s2603_s29 + $0x10] ss:$0 sm:$0xff] }
  0xf4   : > { %1962 = vpow2.f32 %v673_v61  ;;  %v689_v35 = vadd.f32 %v688_v13, %v3124_v9  ;;  %v690_v44 = vadd.f32 %v688_v13, %v684_v5  ;;  %v779_v26 = vadd.f32 %v778_v4, %v3139_v57 }
  0xf5   : > { %v763_v60 = vmul.f32 1.442695, %v760_v49  ;;  %v618_v25 = vsub.f32 %v616_v38, %v2901_v62  ;;  %v774_v22 = vmul.f32 2.0, %v760_v49  ;;  %v871_v53 = vadd.f32 %v3197_v17, %v3149_v56  ;;  %v3248_v49 = vld [vmem:[%s2603_s29 + $0x11] ss:$0 sm:$0xff] }
  0xf6   : > { %v1955_v6 = vpop.eup %1954  ;;  %v816_v7 = vmax.f32 %v3009_v29, 0.0  ;;  %vm3205_vm14 = vcmp.lt.f32.partialorder %v844_v18, 0.0004427343  ;;  %v691_v63 = vsub.f32 %v689_v35, %v2785_v19  ;;  %v692_v9 = vsub.f32 %v690_v44, %v2906_v55  ;;  %v3921_v55 = vld [vmem:[#allocation30_spill] sm:$0xff]  ;;  %v3251_v38 = vld [vmem:[%s2603_s29 + $0x12] ss:$0 sm:$0xff] }
  0xf7   : > { %1964 = vpow2.f32 %v763_v60  ;;  %v840_v57 = vmul.f32 0.6931472, %v1955_v6  ;;  %v780_v45 = vadd.f32 %v778_v4, %v774_v22  ;;  %v3212_v62 = vsub.f32 %v779_v26, %v3920_v39  ;;  %v3254_v35 = vld [vmem:[%s2603_s29 + $0x13] ss:$0 sm:$0xff] }
  0xf8   : > { %v3216_v56 = vrot.slane %v3102_v21, %v2644_v46  ;;  %v3220_v16 = vrot.slane %v3117_v47, %v2644_v46  ;;  %v693_v50 = vmax.f32 %v3174_v51, %v691_v63  ;;  %v694_v10 = vmax.f32 %v618_v25, %v692_v9 }
  0xf9   : > { %vm818_vm15 = vcmp.ne.f32.partialorder %v3009_v29, %v3009_v29  ;;  %v846_v19 = vsel %vm3205_vm14, %v843_v52, %v840_v57  ;;  %v3228_v32 = vsub.f32 %v780_v45, %v3921_v55  ;;  %1966 = vlog2.f32 %v2957_v11 }
  0xfa   : > { %v1957_v40 = vpop.eup %1956  ;;  %v848_v3 = vadd.f32 %v846_v19, %v816_v7  ;;  %v695_v18 = vsub.f32 %v3174_v51, %v693_v50  ;;  %v696_v23 = vsub.f32 %v618_v25, %v694_v10  ;;  %v701_v8 = vsub.f32 %v691_v63, %v693_v50 }
  0xfb   : > { %v904_v28 = vmul.f32 0.6931472, %v1957_v40  ;;  %v702_v15 = vsub.f32 %v692_v9, %v694_v10  ;;  %v3233_v27 = vmax.f32 %v693_v50, %v3212_v62  ;;  %v3236_v34 = vmax.f32 %v694_v10, %v3228_v32  ;;  %v3922_v9 = vld [vmem:[#allocation23_spill] sm:$0xff] }
  0xfc   : > { %v1959_v52 = vpop.eup %1958  ;;  %v850_v20 = vsel %vm818_vm15, %v3009_v29, %v848_v3  ;;  %v697_v2 = vmul.f32 1.442695, %v695_v18  ;;  %v699_v11 = vmul.f32 1.442695, %v696_v23  ;;  %v703_v33 = vmul.f32 1.442695, %v701_v8 }
  0xfd   : > { %v1961_v51 = vpop.eup %1960  ;;  %v910_v48 = vmul.f32 0.6931472, %v1959_v52  ;;  %v852_v36 = vsub.f32 0.0, %v850_v20  ;;  %v785_v61 = vsub.f32 %v693_v50, %v3233_v27  ;;  %1968 = vlog2.f32 %v2881_v0 }
  0xfe   : > { %v1963_v30 = vpop.eup %1962  ;;  %1970 = vpow2.f32 %v697_v2  ;;  %v786_v41 = vsub.f32 %v694_v10, %v3236_v34  ;;  %v793_v29 = vsub.f32 %v3212_v62, %v3233_v27  ;;  %v705_v4 = vmul.f32 1.442695, %v702_v15 }
  0xff   : > { %v913_v5 = vsub.f32 %v904_v28, %v910_v48  ;;  %v855_v13 = vmul.f32 1.442695, %v852_v36  ;;  %1972 = vpow2.f32 %v699_v11  ;;  %v606_v0 = vmul.f32 %v1961_v51, %v3057_v54 }
 0x100   : > { %v680_v44 = vmul.f32 %v1963_v30, %v3077_v31  ;;  %1974 = vpow2.f32 %v703_v33  ;;  %v794_v26 = vsub.f32 %v3228_v32, %v3236_v34  ;;  %v787_v37 = vmul.f32 1.442695, %v785_v61 }
 0x101   : > { %v1965_v60 = vpop.eup %1964  ;;  %v1053_v25 = vmul.f32 %v3092_v42, %v913_v5  ;;  %v1127_v22 = vmul.f32 %v3096_v58, %v913_v5  ;;  %v1217_v6 = vmul.f32 %v3216_v56, %v913_v5  ;;  %v1309_v7 = vmul.f32 %v3220_v16, %v913_v5 }
 0x102   : > { %1976 = vpow2.f32 %v855_v13  ;;  %v789_v63 = vmul.f32 1.442695, %v786_v41  ;;  %v873_v54 = vsub.f32 %v871_v53, %v3922_v9  ;;  %v682_v50 = vadd.f32 %v680_v44, %v606_v0 }
 0x103   : > { %v3265_v57 = vpop.eup %1966  ;;  %v3268_v31 = vadd.f32 %v3245_v59, %v1053_v25  ;;  %v3271_v45 = vadd.f32 %v3248_v49, %v1127_v22  ;;  %v3274_v39 = vadd.f32 %v3251_v38, %v1217_v6  ;;  %v3277_v62 = vadd.f32 %v3254_v35, %v1309_v7 }
 0x104   : > { %v770_v10 = vmul.f32 %v1965_v60, %v3082_v24  ;;  %1978 = vpow2.f32 %v705_v4  ;;  %v866_v19 = vmul.f32 2.0, %v852_v36  ;;  %v3294_v18 = vmax.f32 %v3233_v27, %v873_v54 }
 0x105   : > { %v3281_v53 = vsub.f32 0.0, %v3268_v31  ;;  %v3284_v55 = vsub.f32 0.0, %v3271_v45  ;;  %v3287_v32 = vsub.f32 0.0, %v3274_v39  ;;  %v3290_v40 = vsub.f32 0.0, %v3277_v62 }
 0x106   : > { %1980 = vpow2.f32 %v787_v37  ;;  %v872_v3 = vadd.f32 %v3197_v17, %v866_v19  ;;  %v3296_v24 = vadd.f32 %v910_v48, %v904_v28  ;;  %v795_v15 = vmul.f32 1.442695, %v793_v29 }
 0x107   : > { %v3298_v23 = vpop.eup %1968  ;;  %v1069_v8 = vand.u32 2147483647, %v3281_v53  ;;  %1982 = vlog2.f32 %v3069_v14  ;;  %v1143_v20 = vand.u32 2147483647, %v3284_v55  ;;  %v797_v2 = vmul.f32 1.442695, %v794_v26 }
 0x108   : > { %v1971_v52 = vpop.eup %1970  ;;  %1984 = vlog2.f32 %v3102_v21  ;;  %v1233_v33 = vand.u32 2147483647, %v3287_v32  ;;  %v772_v51 = vadd.f32 %v770_v10, %v682_v50  ;;  %v1325_v36 = vand.u32 2147483647, %v3290_v40 }
 0x109   : > { %v1973_v11 = vpop.eup %1972  ;;  %v1071_v17 = vsub.f32 0.0, %v1069_v8  ;;  %1986 = vlog2.f32 %v3117_v47  ;;  %v1145_v48 = vsub.f32 0.0, %v1143_v20  ;;  %v874_v14 = vsub.f32 %v872_v3, %v2995_v1  ;;  %v3924_v20 = vld [vmem:[#allocation27_spill] sm:$0xff] }
 0x10a   : > { %v1975_v28 = vpop.eup %1974  ;;  %1988 = vpow2.f32 %v789_v63  ;;  %v1235_v30 = vsub.f32 0.0, %v1233_v33  ;;  %v1327_v5 = vsub.f32 0.0, %v1325_v36  ;;  %v877_v0 = vsub.f32 %v3233_v27, %v3294_v18  ;;  %v3926_v36 = vld [vmem:[#allocation29_spill] sm:$0xff] }
 0x10b   : > { %v1073_v61 = vmul.f32 1.442695, %v1071_v17  ;;  %v707_v41 = vadd.f32 %v1975_v28, %v1971_v52  ;;  %1990 = vpow2.f32 %v795_v15  ;;  %v1147_v21 = vmul.f32 1.442695, %v1145_v48  ;;  %v3923_v15 = vld [vmem:[#allocation26_spill] sm:$0xff]  ;;  %v3925_v17 = vld [vmem:[#allocation28_spill] sm:$0xff] }
 0x10c   : > { %v1977_v29 = vpop.eup %1976  ;;  %1992 = vpow2.f32 %v797_v2  ;;  %v3309_v13 = vmax.f32 %v3236_v34, %v874_v14  ;;  %v1237_v47 = vmul.f32 1.442695, %v1235_v30  ;;  %v1329_v1 = vmul.f32 1.442695, %v1327_v5  ;;  %v3339_v28 = vld [vmem:[%s345_s22] sm:$0xff] }
 0x10d   : > { %1994 = vpow2.f32 %v1073_v61  ;;  %v862_v4 = vmul.f32 %v1977_v29, %v3088_v12  ;;  %v885_v60 = vsub.f32 %v873_v54, %v3294_v18  ;;  %v879_v6 = vmul.f32 1.442695, %v877_v0  ;;  %v3927_v30 = vld [vmem:[#allocation20_spill] sm:$0xff] }
 0x10e   : > { %v1979_v44 = vpop.eup %1978  ;;  %1996 = vpow2.f32 %v1147_v21  ;;  %v878_v26 = vsub.f32 %v3236_v34, %v3309_v13  ;;  %v886_v12 = vsub.f32 %v874_v14, %v3309_v13  ;;  %v3320_v10 = vmul.f32 0.6931472, %v3265_v57  ;;  %v3350_v21 = vld [vmem:[%s345_s22 + $0x8] sm:$0xff]  ;;  %s3684_s22 = scalar_lea.hbm %s3819_s6, %s3676_s16 }
 0x10f   : > { %1998 = vpow2.f32 %v1237_v47  ;;  %v864_v25 = vadd.f32 %v862_v4, %v772_v51  ;;  %v708_v22 = vadd.f32 %v1979_v44, %v1973_v11  ;;  %v887_v63 = vmul.f32 1.442695, %v885_v60 }
 0x110   : > { %v1981_v7 = vpop.eup %1980  ;;  %2000 = vpow2.f32 %v1329_v1  ;;  %v881_v37 = vmul.f32 1.442695, %v878_v26  ;;  %v889_v54 = vmul.f32 1.442695, %v886_v12  ;;  %v1029_v52 = vmul.f32 %v3111_v43, %v3923_v15 }
 0x111   : > { %v1983_v27 = vpop.eup %1982  ;;  %v900_v9 = vmul.f32 0.999999, %v864_v25  ;;  %v791_v50 = vmul.f32 %v1981_v7, %v707_v41  ;;  %2002 = vpow2.f32 %v879_v6  ;;  %v1030_v2 = vmul.f32 %v3111_v43, %v3924_v20 }
 0x112   : > { %v1985_v34 = vpop.eup %1984  ;;  %2004 = vpow2.f32 %v881_v37  ;;  %v3330_v33 = vmul.f32 %v3111_v43, %v3925_v17  ;;  %v3343_v14 = vmul.f32 %v3111_v43, %v3926_v36  ;;  %v1033_v41 = vsub.f32 %v3927_v30, %v3320_v10  ;;  %v3928_v43 = vld [vmem:[#allocation22_spill] sm:$0xff] }
 0x113   : > { %v3322_v19 = vpop.eup %1986  ;;  %v902_v3 = vadd.f32 5e-07, %v900_v9  ;;  %2006 = vpow2.f32 %v887_v63  ;;  %v1035_v29 = vmul.f32 0.6931472, %v3298_v23  ;;  %v1037_v4 = vsub.f32 %v3928_v43, %v3320_v10 }
 0x114   : > { %v1989_v8 = vpop.eup %1988  ;;  %2008 = vpow2.f32 %v889_v54  ;;  %v1039_v0 = vmul.f32 0.6931472, %v1983_v27  ;;  %v3364_v23 = vrot.slane %v1029_v52, %v2644_v46  ;;  %v3367_v26 = vrot.slane %v1030_v2, %v2644_v46 }
 0x115   : > { %v1991_v11 = vpop.eup %1990  ;;  %2010 = vlog2.f32 %v902_v3  ;;  %v908_v57 = vsub.f32 1.0, %v902_v3  ;;  %v792_v51 = vmul.f32 %v1989_v8, %v708_v22  ;;  %v1435_v60 = vsub.f32 1.0, %v3339_v28 }
 0x116   : > { %v1993_v48 = vpop.eup %1992  ;;  %v799_v61 = vadd.f32 %v1991_v11, %v791_v50  ;;  %v1063_v22 = vmax.f32 %v3281_v53, 0.0  ;;  %v1137_v6 = vmax.f32 %v3284_v55, 0.0  ;;  %v1436_v37 = vsub.f32 1.0, %v3350_v21  ;;  %v1427_v50 = vld [vmem:[%s416_s10] sm:$0x1]  ;;  %v3929_v11 = vld [vmem:[#allocation24_spill] sm:$0xff] }
 0x117   : > { %v3352_v5 = vpop.eup %1994  ;;  %2012 = vlog2.f32 %v908_v57  ;;  %v800_v47 = vadd.f32 %v1993_v48, %v792_v51  ;;  %v1227_v63 = vmax.f32 %v3287_v32, 0.0  ;;  %v1036_v8 = vadd.f32 %v1035_v29, %v1033_v41  ;;  %s2340_s10 = smov [#allocation9]  }
 0x118   : > { %v3360_v44 = vpop.eup %1996  ;;  %v1077_v1 = vadd.f32 1.0, %v3352_v5  ;;  %v1080_v3 = vmul.f32 -0.5, %v3352_v5  ;;  %v1040_v15 = vadd.f32 %v1039_v0, %v1037_v4  ;;  %v3387_v48 = vmul.f32 0.6931472, %v1985_v34  ;;  %v3930_v34 = vld [vmem:[#allocation25_spill] sm:$0xff]  ;;  %s2206_s21 = sshll.u32 %s2340_s10, 4  ;;  %s2207_s21 = int_to_ptr.vmem [resolvable:$false] %s2206_s21 }
 0x119   : > { %v3370_v25 = vpop.eup %1998  ;;  %v1151_v7 = vadd.f32 1.0, %v3360_v44  ;;  %v1154_v20 = vmul.f32 -0.5, %v3360_v44  ;;  %v1428_v36 = vmul.f32 1.442695, %v1427_v50  ;;  %v1083_v41 = vand.u32 2147483647, %v3352_v5  ;;  %p2209_p0 = scmp.lt.s32.totalorder %s3686_s17, %s2207_s21 }
 0x11a   : > { %v3376_v12 = vpop.eup %2000  ;;  %2014 = vlog2.f32 %v1077_v1  ;;  %v1241_v27 = vadd.f32 1.0, %v3370_v25  ;;  %v1244_v51 = vmul.f32 -0.5, %v3370_v25  ;;  %vm1065_vm0 = vcmp.ne.f32.partialorder %v3281_v53, %v3281_v53  ;;  %s2208_s15 = scalar_lea.vmem %s2207_s21, 512 }
 0x11b   : > { %v2003_v54 = vpop.eup %2002  ;;  %2016 = vlog2.f32 %v1151_v7  ;;  %v1333_v2 = vadd.f32 1.0, %v3376_v12  ;;  %v1081_v0 = vadd.f32 1.0, %v1080_v3  ;;  %v1157_v1 = vand.u32 2147483647, %v3360_v44  ;;  %p2210_p5 = scmp.lt.s32.totalorder %s2208_s15, %s2202_s9 }
 0x11c   : > { %v2005_v52 = vpop.eup %2004  ;;  %2018 = vlog2.f32 %v1241_v27  ;;  %v883_v29 = vmul.f32 %v2003_v54, %v799_v61  ;;  %v1336_v7 = vmul.f32 -0.5, %v3376_v12  ;;  %vm1139_vm1 = vcmp.ne.f32.partialorder %v3284_v55, %v3284_v55 }
 0x11d   : > { %v2007_v57 = vpop.eup %2006  ;;  %2020 = vrcp.f32 %v1435_v60  ;;  %v884_v43 = vmul.f32 %v2005_v52, %v800_v47  ;;  %v1155_v60 = vadd.f32 1.0, %v1154_v20  ;;  %vm1229_vm2 = vcmp.ne.f32.partialorder %v3287_v32, %v3287_v32  ;;  %p2211_p10 = por %p2210_p5, %p2209_p0 }
 0x11e   : > { %v2009_v30 = vpop.eup %2008  ;;  %2022 = vlog2.f32 %v1333_v2  ;;  %v891_v2 = vadd.f32 %v2007_v57, %v883_v29  ;;  %v1245_v54 = vadd.f32 1.0, %v1244_v51  ;;  %v1247_v3 = vand.u32 2147483647, %v3370_v25 }
 0x11f   : > { %v2011_v4 = vpop.eup %2010  ;;  %v892_v61 = vadd.f32 %v2009_v30, %v884_v43  ;;  %v3402_v52 = vmul.f32 0.6931472, %v3322_v19  ;;  %v3405_v17 = vrot.slane %v1036_v8, %v2644_v46  ;;  %vm3407_vm3 = vcmp.lt.f32.partialorder %v1083_v41, 0.0004427343  ;;  %p2212_p11 = pnand %p2211_p10, %p2205_p12 }
 0x120   : > { %v906_v50 = vmul.f32 0.6931472, %v2011_v4  ;;  %v3412_v57 = vrot.slane %v1040_v15, %v2644_v46  ;;  %2024 = vpow2.f32 %v1428_v36  ;;  %v1082_v30 = vmul.f32 %v3352_v5, %v1081_v0 }
 0x121   : > { %v2013_v47 = vpop.eup %2012  ;;  %vm3415_vm4 = vcmp.lt.f32.partialorder %v1157_v1, 0.0004427343  ;;  %vm1321_vm5 = vcmp.ne.f32.partialorder %v3290_v40, %v3290_v40  ;;  %v1337_v19 = vadd.f32 1.0, %v1336_v7  ;;  %v1339_v8 = vand.u32 2147483647, %v3376_v12 }
 0x122   : > { %v912_v20 = vmul.f32 0.6931472, %v2013_v47  ;;  %v1156_v29 = vmul.f32 %v3360_v44, %v1155_v60  ;;  %2026 = vlog2.f32 %v891_v2  ;;  %v1246_v5 = vmul.f32 %v3370_v25, %v1245_v54 }
 0x123   : > { %vm3426_vm6 = vcmp.lt.f32.partialorder %v1247_v3, 0.0004427343  ;;  %2028 = vlog2.f32 %v892_v61  ;;  %v1338_v25 = vmul.f32 %v3376_v12, %v1337_v19  ;;  %vm3436_vm7 = vcmp.lt.f32.partialorder %v1339_v8, 0.0004427343 }
 0x124   : > { %v2015_v41 = vpop.eup %2014  ;;  %v914_v43 = vsub.f32 %v906_v50, %v912_v20  ;;  %v3423_v15 = vadd.f32 %v912_v20, %v906_v50  ;;  %2030 = vrcp.f32 %v1436_v37  ;;  %v3939_v19 = vmax.f32 %v3290_v40, 0.0 }
 0x125   : > { %v2017_v36 = vpop.eup %2016  ;;  %v1079_v4 = vmul.f32 0.6931472, %v2015_v41 }
 0x126   : > { %v2019_v1 = vpop.eup %2018  ;;  %v1153_v7 = vmul.f32 0.6931472, %v2017_v36  ;;  %v1054_v47 = vmul.f32 %v3092_v42, %v914_v43  ;;  %v1128_v9 = vmul.f32 %v3096_v58, %v914_v43  ;;  %v1218_v44 = vmul.f32 %v3216_v56, %v914_v43 }
 0x127   : > { %v2021_v60 = vpop.eup %2020  ;;  %v1085_v50 = vsel %vm3407_vm3, %v1082_v30, %v1079_v4  ;;  %v1243_v2 = vmul.f32 0.6931472, %v2019_v1  ;;  %v1310_v0 = vmul.f32 %v3220_v16, %v914_v43 }
 0x128   : > { %v2023_v61 = vpop.eup %2022  ;;  %v1095_v3 = vadd.f32 %v1085_v50, %v1063_v22  ;;  %v1159_v42 = vsel %vm3415_vm4, %v1156_v29, %v1153_v7  ;;  %v3445_v58 = vadd.f32 %v3245_v59, %v1054_v47  ;;  %v3448_v56 = vadd.f32 %v3248_v49, %v1128_v9 }
 0x129   : > { %v1169_v12 = vadd.f32 %v1159_v42, %v1137_v6  ;;  %v1249_v27 = vsel %vm3426_vm6, %v1246_v5, %v1243_v2  ;;  %v1335_v20 = vmul.f32 0.6931472, %v2023_v61  ;;  %v3455_v30 = vadd.f32 %v3251_v38, %v1218_v44 }
 0x12a   : > { %v1097_v22 = vsel %vm1065_vm0, %v3281_v53, %v1095_v3  ;;  %v1259_v59 = vadd.f32 %v1249_v27, %v1227_v63  ;;  %v3464_v49 = vsub.f32 0.0, %v3445_v58  ;;  %v1438_v6 = vmul.f32 %v2021_v60, %v3339_v28  ;;  %v3475_v53 = vpop.eup %2024 }
 0x12b   : > { %v1099_v9 = vsub.f32 0.0, %v1097_v22  ;;  %v1171_v38 = vsel %vm1139_vm1, %v3284_v55, %v1169_v12  ;;  %v1341_v51 = vsel %vm3436_vm7, %v1338_v25, %v1335_v20  ;;  %v3484_v41 = vsub.f32 0.0, %v3448_v56 }
 0x12c   : > { %v1173_v63 = vsub.f32 0.0, %v1171_v38  ;;  %v1261_v28 = vsel %vm1229_vm2, %v3287_v32, %v1259_v59  ;;  %v1351_v8 = vadd.f32 %v1341_v51, %v3939_v19  ;;  %v1070_v36 = vand.u32 2147483647, %v3464_v49  ;;  %v2027_v4 = vpop.eup %2026 }
 0x12d   : > { %v1101_v55 = vmul.f32 1.442695, %v1099_v9  ;;  %v1263_v29 = vsub.f32 0.0, %v1261_v28  ;;  %v3488_v37 = vsub.f32 0.0, %v3455_v30  ;;  %2032 = vlog2.f32 %v1438_v6  ;;  %v2029_v1 = vpop.eup %2028 }
 0x12e   : > { %v1175_v5 = vmul.f32 1.442695, %v1173_v63  ;;  %v1353_v32 = vsel %vm1321_vm5, %v3290_v40, %v1351_v8  ;;  %v1072_v44 = vsub.f32 0.0, %v1070_v36  ;;  %v1144_v60 = vand.u32 2147483647, %v3484_v41 }
 0x12f   : > { %2034 = vpow2.f32 %v1101_v55  ;;  %v1265_v7 = vmul.f32 1.442695, %v1263_v29  ;;  %v1355_v47 = vsub.f32 0.0, %v1353_v32  ;;  %v3940_v50 = vsub.f32 %v3929_v11, %v3320_v10 }
 0x130   : > { %2036 = vpow2.f32 %v1175_v5  ;;  %v3941_v25 = vsub.f32 %v3930_v34, %v3320_v10  ;;  %v1075_v43 = vmul.f32 1.442695, %v1072_v44  ;;  %v1234_v54 = vand.u32 2147483647, %v3488_v37 }
 0x131   : > { %v1044_v2 = vadd.f32 %v3387_v48, %v3940_v50  ;;  %2038 = vpow2.f32 %v1265_v7  ;;  %v1357_v16 = vmul.f32 1.442695, %v1355_v47  ;;  %v1146_v61 = vsub.f32 0.0, %v1144_v60 }
 0x132   : > { %v1048_v40 = vadd.f32 %v3402_v52, %v3941_v25  ;;  %v3506_v3 = vadd.f32 %v3254_v35, %v1310_v0  ;;  %v894_v42 = vmul.f32 0.6931472, %v2027_v4  ;;  %v896_v12 = vmul.f32 0.6931472, %v2029_v1  ;;  %v2031_v52 = vpop.eup %2030 }
 0x133   : > { %2040 = vpow2.f32 %v1357_v16  ;;  %v1236_v11 = vsub.f32 0.0, %v1234_v54  ;;  %v1113_v27 = vmul.f32 2.0, %v1099_v9  ;;  %v1187_v48 = vmul.f32 2.0, %v1173_v63  ;;  %v1769_v54 = vld [vmem:[%s413_s20] ss:$0 sm:$0xff] }
 0x134   : > { %2042 = vpow2.f32 %v1075_v43  ;;  %v1149_v20 = vmul.f32 1.442695, %v1146_v61  ;;  %v3509_v10 = vsub.f32 0.0, %v3506_v3  ;;  %v897_v34 = vadd.f32 %v894_v42, %v3294_v18 }
 0x135   : > { %v1239_v22 = vmul.f32 1.442695, %v1236_v11  ;;  %v898_v59 = vadd.f32 %v896_v12, %v3309_v13  ;;  %v1119_v35 = vadd.f32 %v3405_v17, %v1113_v27  ;;  %v1193_v6 = vadd.f32 %v3412_v57, %v1187_v48 }
 0x136   : > { %v3517_v38 = vrot.slane %v3330_v33, %v2644_v46  ;;  %2044 = vpow2.f32 %v1149_v20  ;;  %v1326_v9 = vand.u32 2147483647, %v3509_v10  ;;  %v3521_v51 = vrot.slane %v1044_v2, %v2644_v46 }
 0x137   : > { %2046 = vpow2.f32 %v1239_v22  ;;  %v3523_v18 = vadd.f32 -1.0000005e-06, %v897_v34  ;;  %v3525_v63 = vadd.f32 -1.0000005e-06, %v898_v59  ;;  %v1121_v13 = vsub.f32 %v1119_v35, %v3268_v31  ;;  %v2033_v28 = vpop.eup %2032 }
 0x138   : > { %v3530_v19 = vrot.slane %v3343_v14, %v2644_v46  ;;  %v1328_v33 = vsub.f32 0.0, %v1326_v9  ;;  %v1195_v8 = vsub.f32 %v1193_v6, %v3271_v45  ;;  %v1277_v55 = vmul.f32 2.0, %v1263_v29 }
 0x139   : > { %v2035_v36 = vpop.eup %2034  ;;  %v919_v4 = vsub.f32 %v3523_v18, %v3296_v24  ;;  %v920_v5 = vsub.f32 %v3525_v63, %v3423_v15  ;;  %v3538_v32 = vrot.slane %v1048_v40, %v2644_v46  ;;  %v1440_v31 = vmul.f32 %v2031_v52, %v3350_v21 }
 0x13a   : > { %v2037_v0 = vpop.eup %2036  ;;  %v1109_v14 = vmul.f32 %v2035_v36, %v3364_v23  ;;  %v1331_v1 = vmul.f32 1.442695, %v1328_v33  ;;  %v1197_v45 = vmax.f32 %v1121_v13, %v1195_v8  ;;  %v1283_v29 = vadd.f32 %v3521_v51, %v1277_v55 }
 0x13b   : > { %v2039_v7 = vpop.eup %2038  ;;  %v1183_v44 = vmul.f32 %v2037_v0, %v3367_v26  ;;  %v1369_v60 = vmul.f32 2.0, %v1355_v47  ;;  %v3549_v50 = vadd.f32 1.0, %v3475_v53  ;;  %2048 = vlog2.f32 %v1440_v31 }
 0x13c   : > { %v1273_v21 = vmul.f32 %v2039_v7, %v3517_v38  ;;  %2050 = vpow2.f32 %v1331_v1  ;;  %v1199_v2 = vsub.f32 %v1121_v13, %v1197_v45  ;;  %v1442_v25 = vmul.f32 0.6931472, %v2033_v28 }
 0x13d   : > { %v2041_v40 = vpop.eup %2040  ;;  %v1185_v16 = vadd.f32 %v1183_v44, %v1109_v14  ;;  %v1285_v43 = vsub.f32 %v1283_v29, %v3274_v39  ;;  %v1205_v12 = vsub.f32 %v1195_v8, %v1197_v45  ;;  %v1375_v53 = vadd.f32 %v3538_v32, %v1369_v60 }
 0x13e   : > { %v2043_v61 = vpop.eup %2042  ;;  %v1365_v42 = vmul.f32 %v2041_v40, %v3530_v19  ;;  %v1201_v27 = vmul.f32 1.442695, %v1199_v2  ;;  %v1064_v20 = vmax.f32 %v3464_v49, 0.0  ;;  %v3557_v52 = vadd.f32 -1.0, %v3549_v50 }
 0x13f   : > { %v1275_v11 = vadd.f32 %v1273_v21, %v1185_v16  ;;  %v1086_v47 = vadd.f32 1.0, %v2043_v61  ;;  %v1287_v34 = vmax.f32 %v1197_v45, %v1285_v43  ;;  %v1452_v22 = vadd.f32 %v1769_v54, %v1442_v25 }
 0x140   : > { %v2045_v48 = vpop.eup %2044  ;;  %v1089_v35 = vmul.f32 -0.5, %v2043_v61  ;;  %v1092_v6 = vand.u32 2147483647, %v2043_v61  ;;  %v1138_v9 = vmax.f32 %v3484_v41, 0.0  ;;  %v1207_v33 = vmul.f32 1.442695, %v1205_v12 }
 0x141   : > { %v2047_v59 = vpop.eup %2046  ;;  %v1367_v39 = vadd.f32 %v1365_v42, %v1275_v11  ;;  %2052 = vlog2.f32 %v1086_v47  ;;  %v1160_v13 = vadd.f32 1.0, %v2045_v48  ;;  %v1228_v55 = vmax.f32 %v3488_v37, 0.0 }
 0x142   : > { %v1250_v28 = vadd.f32 1.0, %v2047_v59  ;;  %2054 = vpow2.f32 %v1201_v27  ;;  %v1377_v36 = vsub.f32 %v1375_v53, %v3277_v62  ;;  %v1163_v31 = vmul.f32 -0.5, %v2045_v48 }
 0x143   : > { %v1403_v8 = vmul.f32 0.999999, %v1367_v39  ;;  %2056 = vlog2.f32 %v1160_v13  ;;  %v1289_v0 = vsub.f32 %v1197_v45, %v1287_v34  ;;  %v1770_v14 = vmul.f32 -1.1111112, %v1452_v22 }
 0x144   : > { %v1090_v7 = vadd.f32 1.0, %v1089_v35  ;;  %vm3562_vm8 = vcmp.lt.f32.partialorder %v1092_v6, 0.0004427343  ;;  %2058 = vlog2.f32 %v1250_v28  ;;  %vm1066_vm9 = vcmp.ne.f32.partialorder %v3464_v49, %v3464_v49 }
 0x145   : > { %v2049_v1 = vpop.eup %2048  ;;  %v1405_v29 = vadd.f32 5e-07, %v1403_v8  ;;  %v1253_v21 = vmul.f32 -0.5, %v2047_v59  ;;  %2060 = vpow2.f32 %v1207_v33  ;;  %v1291_v62 = vmul.f32 1.442695, %v1289_v0 }
 0x146   : > { %v3566_v60 = vpop.eup %2050  ;;  %v1297_v2 = vsub.f32 %v1285_v43, %v1287_v34  ;;  %v1166_v25 = vand.u32 2147483647, %v2045_v48  ;;  %v1164_v16 = vadd.f32 1.0, %v1163_v31  ;;  %v1256_v42 = vand.u32 2147483647, %v2047_v59 }
 0x147   : > { %2062 = vlog2.f32 %v1405_v29  ;;  %v1411_v45 = vsub.f32 1.0, %v1405_v29  ;;  %v1342_v40 = vadd.f32 1.0, %v3566_v60  ;;  %vm1140_vm10 = vcmp.ne.f32.partialorder %v3484_v41, %v3484_v41 }
 0x148   : > { %2064 = vpow2.f32 %v1291_v62  ;;  %v1299_v12 = vmul.f32 1.442695, %v1297_v2  ;;  %v3573_v11 = vmax.f32 %v1287_v34, %v1377_v36  ;;  %v1444_v47 = vmul.f32 0.6931472, %v2049_v1 }
 0x149   : > { %2066 = vlog2.f32 %v1411_v45  ;;  %v1459_v27 = vmul.f32 1.442695, %v1770_v14  ;;  %v1091_v53 = vmul.f32 %v2043_v61, %v1090_v7  ;;  %v1254_v22 = vadd.f32 1.0, %v1253_v21 }
 0x14a   : > { %2068 = vlog2.f32 %v1342_v40  ;;  %v1345_v43 = vmul.f32 -0.5, %v3566_v60  ;;  %v1381_v35 = vsub.f32 %v1287_v34, %v3573_v11  ;;  %v1389_v6 = vsub.f32 %v1377_v36, %v3573_v11 }
 0x14b   : > { %v2053_v39 = vpop.eup %2052  ;;  %2070 = vpow2.f32 %v1299_v12  ;;  %v1453_v13 = vadd.f32 %v1769_v54, %v1444_v47  ;;  %vm3578_vm11 = vcmp.lt.f32.partialorder %v1166_v25, 0.0004427343  ;;  %vm3582_vm12 = vcmp.lt.f32.partialorder %v1256_v42, 0.0004427343 }
 0x14c   : > { %v1088_v28 = vmul.f32 0.6931472, %v2053_v39  ;;  %2072 = vpow2.f32 %v1459_v27  ;;  %v2055_v61 = vpop.eup %2054  ;;  %v1165_v31 = vmul.f32 %v2045_v48, %v1164_v16  ;;  %v1383_v0 = vmul.f32 1.442695, %v1381_v35 }
 0x14d   : > { %v1391_v14 = vmul.f32 1.442695, %v1389_v6  ;;  %v1771_v1 = vmul.f32 -1.1111112, %v1453_v13  ;;  %v2057_v29 = vpop.eup %2056  ;;  %v1255_v54 = vmul.f32 %v2047_v59, %v1254_v22  ;;  %v1346_v36 = vadd.f32 1.0, %v1345_v43 }
 0x14e   : > { %v1094_v34 = vsel %vm3562_vm8, %v1091_v53, %v1088_v28  ;;  %v1348_v7 = vand.u32 2147483647, %v3566_v60  ;;  %v2059_v21 = vpop.eup %2058  ;;  %v1162_v2 = vmul.f32 0.6931472, %v2057_v29  ;;  %2074 = vpow2.f32 %v1383_v0 }
 0x14f   : > { %v1096_v62 = vadd.f32 %v1094_v34, %v1064_v20  ;;  %v1461_v45 = vmul.f32 1.442695, %v1771_v1  ;;  %v2061_v25 = vpop.eup %2060  ;;  %vm1230_vm13 = vcmp.ne.f32.partialorder %v3488_v37, %v3488_v37  ;;  %v1252_v48 = vmul.f32 0.6931472, %v2059_v21 }
 0x150   : > { %v1320_v40 = vmax.f32 %v3509_v10, 0.0  ;;  %2076 = vpow2.f32 %v1391_v14  ;;  %v1168_v20 = vsel %vm3578_vm11, %v1165_v31, %v1162_v2  ;;  %v1211_v16 = vadd.f32 %v2061_v25, %v2055_v61 }
 0x151   : > { %v2063_v44 = vpop.eup %2062  ;;  %v1098_v59 = vsel %vm1066_vm9, %v3464_v49, %v1096_v62  ;;  %2078 = vpow2.f32 %v1461_v45  ;;  %v1170_v47 = vadd.f32 %v1168_v20, %v1138_v9  ;;  %v1258_v27 = vsel %vm3582_vm12, %v1255_v54, %v1252_v48 }
 0x152   : > { %v2065_v42 = vpop.eup %2064  ;;  %v1100_v12 = vsub.f32 0.0, %v1098_v59  ;;  %vm3604_vm14 = vcmp.lt.f32.partialorder %v1348_v7, 0.0004427343  ;;  %v3608_v43 = vmul.f32 0.6931472, %v2063_v44  ;;  %v1260_v49 = vadd.f32 %v1258_v27, %v1228_v55 }
 0x153   : > { %v2067_v22 = vpop.eup %2066  ;;  %v1347_v39 = vmul.f32 %v3566_v60, %v1346_v36  ;;  %v1295_v35 = vmul.f32 %v2065_v42, %v1211_v16  ;;  %v1172_v28 = vsel %vm1140_vm10, %v3484_v41, %v1170_v47  ;;  %vm1322_vm15 = vcmp.ne.f32.partialorder %v3509_v10, %v3509_v10 }
 0x154   : > { %v2069_v6 = vpop.eup %2068  ;;  %v3613_v13 = vmul.f32 0.6931472, %v2067_v22  ;;  %v1103_v9 = vmul.f32 1.442695, %v1100_v12  ;;  %v1114_v33 = vmul.f32 2.0, %v1100_v12  ;;  %v1174_v61 = vsub.f32 0.0, %v1172_v28 }
 0x155   : > { %v2071_v8 = vpop.eup %2070  ;;  %v1262_v55 = vsel %vm1230_vm13, %v3488_v37, %v1260_v49  ;;  %v1344_v60 = vmul.f32 0.6931472, %v2069_v6  ;;  %v1432_v21 = vsub.f32 0.0, %v3557_v52 }
 0x156   : > { %v2073_v31 = vpop.eup %2072  ;;  %v3627_v0 = vsub.f32 %v3608_v43, %v3613_v13  ;;  %2080 = vpow2.f32 %v1103_v9  ;;  %v1264_v41 = vsub.f32 0.0, %v1262_v55  ;;  %v1120_v14 = vadd.f32 %v3405_v17, %v1114_v33 }
 0x157   : > { %v1177_v1 = vmul.f32 1.442695, %v1174_v61  ;;  %v1350_v29 = vsel %vm3604_vm14, %v1347_v39, %v1344_v60  ;;  %v1188_v34 = vmul.f32 2.0, %v1174_v61  ;;  %v1303_v54 = vadd.f32 %v2071_v8, %v1295_v35 }
 0x158   : > { %1494 = vst [vmem:[%s3633_s13] sm:$0xff] %v3627_v0  ;;  %v1267_v37 = vmul.f32 1.442695, %v1264_v41  ;;  %v1352_v36 = vadd.f32 %v1350_v29, %v1320_v40  ;;  %v1278_v7 = vmul.f32 2.0, %v1264_v41  ;;  %v2075_v62 = vpop.eup %2074  ;;  %v1122_v17 = vsub.f32 %v1120_v14, %v3445_v58 }
 0x159   : > { %2082 = vpow2.f32 %v1177_v1  ;;  %v1194_v2 = vadd.f32 %v3412_v57, %v1188_v34  ;;  %v1463_v45 = vadd.f32 1.0, %v2073_v31  ;;  %v1387_v40 = vmul.f32 %v2075_v62, %v1303_v54 }
 0x15a   : > { %v2077_v25 = vpop.eup %2076  ;;  %2084 = vpow2.f32 %v1267_v37  ;;  %v1354_v48 = vsel %vm1322_vm15, %v3509_v10, %v1352_v36  ;;  %v1284_v44 = vadd.f32 %v3521_v51, %v1278_v7  ;;  %v1469_v27 = vsub.f32 %v3549_v50, %v1432_v21 }
 0x15b   : > { %v2079_v59 = vpop.eup %2078  ;;  %v1356_v20 = vsub.f32 0.0, %v1354_v48  ;;  %v1196_v52 = vsub.f32 %v1194_v2, %v3448_v56  ;;  %2086 = vrcp.f32 %v1463_v45  ;;  %v1395_v16 = vadd.f32 %v2077_v25, %v1387_v40 }
 0x15c   : > { %v1286_v58 = vsub.f32 %v1284_v44, %v3455_v30  ;;  %v1464_v47 = vadd.f32 1.0, %v2079_v59  ;;  %v1474_v50 = vrot.slane %v1469_v27, %v2644_v46 }
 0x15d   : > { %v1359_v57 = vmul.f32 1.442695, %v1356_v20  ;;  %v1198_v42 = vmax.f32 %v1122_v17, %v1196_v52  ;;  %v1370_v12 = vmul.f32 2.0, %v1356_v20  ;;  %2088 = vlog2.f32 %v1395_v16 }
 0x15f   : > { %2090 = vpow2.f32 %v1359_v57  ;;  %v1200_v10 = vsub.f32 %v1122_v17, %v1198_v42  ;;  %v1206_v53 = vsub.f32 %v1196_v52, %v1198_v42  ;;  %v1288_v51 = vmax.f32 %v1198_v42, %v1286_v58 }
 0x160   : > { %v2081_v22 = vpop.eup %2080  ;;  %v1376_v49 = vadd.f32 %v3538_v32, %v1370_v12  ;;  %2092 = vrcp.f32 %v1464_v47 }
 0x161   : > { %v1203_v39 = vmul.f32 1.442695, %v1200_v10  ;;  %v1209_v56 = vmul.f32 1.442695, %v1206_v53  ;;  %v1290_v35 = vsub.f32 %v1198_v42, %v1288_v51  ;;  %v1110_v30 = vmul.f32 %v2081_v22, %v3364_v23 }
 0x162   : > { %v1298_v6 = vsub.f32 %v1286_v58, %v1288_v51  ;;  %v1378_v9 = vsub.f32 %v1376_v49, %v3506_v3  ;;  %v1482_v23 = vrot.slane %v1432_v21, %v2644_v46 }
 0x163   : > { %v2083_v28 = vpop.eup %2082  ;;  %2094 = vpow2.f32 %v1203_v39  ;;  %v1293_v33 = vmul.f32 1.442695, %v1290_v35 }
 0x164   : > { %v2085_v8 = vpop.eup %2084  ;;  %v1184_v61 = vmul.f32 %v2083_v28, %v3367_v26  ;;  %2096 = vpow2.f32 %v1209_v56  ;;  %v1301_v55 = vmul.f32 1.442695, %v1298_v6  ;;  %v3653_v32 = vmax.f32 %v1288_v51, %v1378_v9 }
 0x165   : > { %v2087_v60 = vpop.eup %2086  ;;  %v1274_v31 = vmul.f32 %v2085_v8, %v3517_v38  ;;  %2098 = vpow2.f32 %v1293_v33  ;;  %v1421_v38 = vadd.f32 %v3613_v13, %v3608_v43 }
 0x166   : > { %v1186_v3 = vadd.f32 %v1184_v61, %v1110_v30  ;;  %2100 = vpow2.f32 %v1301_v55  ;;  %v1382_v41 = vsub.f32 %v1288_v51, %v3653_v32  ;;  %v1390_v14 = vsub.f32 %v1378_v9, %v3653_v32 }
 0x167   : > { %v1476_v1 = vmul.f32 %v2087_v60, %v1474_v50  ;;  %v2089_v29 = vpop.eup %2088 }
 0x168   : > { %v1276_v34 = vadd.f32 %v1274_v31, %v1186_v3  ;;  %v1385_v26 = vmul.f32 1.442695, %v1382_v41  ;;  %v1393_v54 = vmul.f32 1.442695, %v1390_v14  ;;  %v1398_v36 = vmul.f32 0.6931472, %v2089_v29 }
 0x169   : > { %v2091_v37 = vpop.eup %2090  ;;  %v1484_v7 = vadd.f32 %v1482_v23, %v1476_v1 }
 0x16a   : > { %v1366_v62 = vmul.f32 %v2091_v37, %v3530_v19  ;;  %2102 = vpow2.f32 %v1385_v26  ;;  %v1401_v46 = vadd.f32 %v1398_v36, %v3573_v11  ;;  %v2093_v17 = vpop.eup %2092 }
 0x16b   : > { %2104 = vpow2.f32 %v1393_v54  ;;  %v1486_v21 = vmax.f32 %v1484_v7, 0.0  ;;  %v1477_v42 = vmul.f32 %v2093_v17, %v1474_v50 }
 0x16c   : > { %v1368_v2 = vadd.f32 %v1366_v62, %v1276_v34  ;;  %v1419_v25 = vadd.f32 -1.0000005e-06, %v1401_v46 }
 0x16d   : > { %v2095_v45 = vpop.eup %2094  ;;  %v1488_v48 = vmin.f32 %v1486_v21, 1.0 }
 0x16e   : > { %v2097_v44 = vpop.eup %2096  ;;  %v1404_v40 = vmul.f32 0.999999, %v1368_v2  ;;  %v1423_v19 = vsub.f32 %v1419_v25, %v1421_v38 }
 0x16f   : > { %v2099_v59 = vpop.eup %2098  ;;  %v1212_v20 = vadd.f32 %v2097_v44, %v2095_v45  ;;  %v1490_v52 = vmul.f32 %v1488_v48, %v3627_v0 }
 0x170   : > { %v2101_v58 = vpop.eup %2100  ;;  %v1406_v11 = vadd.f32 5e-07, %v1404_v40  ;;  %v1425_v43 = vadd.f32 %v1423_v19, %v919_v4  ;;  %v1485_v4 = vadd.f32 %v1482_v23, %v1477_v42 }
 0x171   : > { %v1296_v16 = vmul.f32 %v2099_v59, %v1212_v20  ;;  %1492 = vst [vmem:[%s3668_s14] sm:$0xff] %v1490_v52 }
 0x172   : > { %2106 = vlog2.f32 %v1406_v11  ;;  %v1412_v13 = vsub.f32 1.0, %v1406_v11  ;;  %1496 = vst [vmem:[%s3672_s26] sm:$0xff] %v1425_v43  ;;  %v1487_v47 = vmax.f32 %v1485_v4, 0.0 }
 0x173   : > { %v1304_v57 = vadd.f32 %v2101_v58, %v1296_v16 }
 0x174   : > { %v2103_v0 = vpop.eup %2102  ;;  %2108 = vlog2.f32 %v1412_v13  ;;  %v1489_v22 = vmin.f32 %v1487_v47, 1.0 }
 0x175   : > { %v2105_v12 = vpop.eup %2104  ;;  %v1388_v24 = vmul.f32 %v2103_v0, %v1304_v57 }
 0x177   : > { %v1396_v18 = vadd.f32 %v2105_v12, %v1388_v24 }
 0x179   : > { %2110 = vlog2.f32 %v1396_v18 }
 0x17c   : > { %v2107_v27 = vpop.eup %2106 }
 0x17d   : > { %v1410_v53 = vmul.f32 0.6931472, %v2107_v27 }
 0x17e   : > { %v2109_v10 = vpop.eup %2108 }
 0x17f   : > { %v1416_v51 = vmul.f32 0.6931472, %v2109_v10 }
 0x181   : > { %v1418_v49 = vsub.f32 %v1410_v53, %v1416_v51 }
 0x183   : > { %v2111_v39 = vpop.eup %2110  ;;  %1495 = vst [vmem:[%s3633_s13 + $0x8] sm:$0xff] %v1418_v49  ;;  %v1491_v56 = vmul.f32 %v1489_v22, %v1418_v49 }
 0x184   : > { %v1400_v35 = vmul.f32 0.6931472, %v2111_v39 }
 0x185   : > { %2215 = shalt.err (!%p2212_p11)
}
 0x186   : > { %s2216_s28 = scalar_lea.hbm %s3684_s22, 256  ;;  %s2220_s13 = scalar_lea.hbm %s3819_s6, 512 }
 0x187   : > { %p2217_p1 = scmp.ne.s32.totalorder %s3684_s22, %s2216_s28  ;;  %p2221_p3 = scmp.lt.u32.totalorder %s3684_s22, %s3819_s6 }
 0x188   : > { %p2222_p2 = scmp.lt.u32.totalorder %s2220_s13, %s2216_s28  ;;  %p2224_p8 = scmp.lt.u32.totalorder %s2216_s28, %s3684_s22 }
 0x189   : > { %p2218_p4 = pnand %p2217_p1, %p3950_p6 }
 0x18a   : > { %p2223_p13 = por %p2222_p2, %p2221_p3 }
 0x18b   : > { %p2219_p7 = pneg %p2218_p4 }
 0x18c   : > { %p2225_p9 = por %p2224_p8, %p2223_p13 }
 0x18e   : > { %p2226_p12 = pnand %p2225_p9, %p2219_p7 }
 0x190   : > { %2229 = shalt.err (!%p2226_p12)
}
 0x191   : > { %s2341_s23 = smov 128   ;;  %s2342_s29 = smov 256   ;;  %1493 = vst [vmem:[%s3668_s14 + $0x8] sm:$0xff] %v1491_v56  ;;  %v1402_v30 = vadd.f32 %v1400_v35, %v3653_v32  ;;  %v1422_v6 = vadd.f32 %v1416_v51, %v1410_v53 }
 0x192   : > { %s2343_s9 = smov 8   ;;  %s1499_s10 = scalar_lea.sflag [#allocation4], %s2583_s0 }
 0x193   : > { %1789 = dma.vmem_to_hbm [thread:$0]  (%p3950_p6), %s3686_s17, 256, %s3684_s22, %s3699_s1, %s2341_s23, %s2342_s29, %s2343_s9  }
 0x194   : > { %s2230_s21 = scalar_lea.vmem %s3695_s19, 256  ;;  %s2344_s15 = smov [#allocation8]  }
 0x195   : > { %p2231_p0 = scmp.ne.s32.totalorder %s3695_s19, %s2230_s21  ;;  %s2234_s28 = sshll.u32 %s2344_s15, 4  ;;  %s2235_s28 = int_to_ptr.vmem [resolvable:$false] %s2234_s28 }
 0x196   : > { %s2236_s8 = scalar_lea.vmem %s2235_s28, 512  ;;  %p2237_p11 = scmp.lt.s32.totalorder %s3695_s19, %s2235_s28 }
 0x197   : > { %p2232_p5 = pnand %p2231_p0, %p3950_p6  ;;  %p2238_p1 = scmp.lt.s32.totalorder %s2236_s8, %s2230_s21 }
 0x199   : > { %p2233_p10 = pneg %p2232_p5  ;;  %p2239_p4 = por %p2238_p1, %p2237_p11 }
 0x19b   : > { %p2240_p7 = pnand %p2239_p4, %p2233_p10 }
 0x19d   : > { %2243 = shalt.err (!%p2240_p7)
}
 0x19e   : > { %s2244_s14 = scalar_lea.hbm %s3693_s11, 256  ;;  %s2248_s20 = scalar_lea.hbm %s3818_s5, 512 }
 0x19f   : > { %p2245_p3 = scmp.ne.s32.totalorder %s3693_s11, %s2244_s14  ;;  %p2249_p8 = scmp.lt.u32.totalorder %s3693_s11, %s3818_s5 }
 0x1a0   : > { %p2250_p9 = scmp.lt.u32.totalorder %s2248_s20, %s2244_s14  ;;  %p2252_p0 = scmp.lt.u32.totalorder %s2244_s14, %s3693_s11 }
 0x1a1   : > { %p2246_p2 = pnand %p2245_p3, %p3950_p6 }
 0x1a2   : > { %p2251_p12 = por %p2250_p9, %p2249_p8 }
 0x1a3   : > { %p2247_p13 = pneg %p2246_p2 }
 0x1a4   : > { %p2253_p5 = por %p2252_p0, %p2251_p12 }
 0x1a6   : > { %p2254_p10 = pnand %p2253_p5, %p2247_p13 }
 0x1a8   : > { %2257 = shalt.err (!%p2254_p10)
}
 0x1a9   : > { %1788 = dma.vmem_to_hbm [thread:$0]  (%p3950_p6), %s3695_s19, 256, %s3693_s11, %s1499_s10, %s2341_s23, %s2342_s29, %s2343_s9   ;;  %v1420_v9 = vadd.f32 -1.0000005e-06, %v1402_v30 }
 0x1aa   : > { %s1551_s18 = sshll.u32 %s3672_s26, 4  ;;  %s3763_s28 = scalar_lea.hbm %s3820_s7, %s3676_s16  ;;  %s3765_s18 = int_to_ptr.vmem [resolvable:$true] %s1551_s18 }
 0x1ab   : > { %v1424_v28 = vsub.f32 %v1420_v9, %v1422_v6  ;;  %s2258_s0 = scalar_lea.vmem %s3765_s18, 256  ;;  %s2345_s19 = smov [#allocation11]  }
 0x1ac   : > { %p2259_p11 = scmp.ne.s32.totalorder %s3765_s18, %s2258_s0  ;;  %s2262_s11 = sshll.u32 %s2345_s19, 4  ;;  %s2263_s11 = int_to_ptr.vmem [resolvable:$false] %s2262_s11 }
 0x1ad   : > { %v1426_v33 = vadd.f32 %v1424_v28, %v920_v5  ;;  %s2264_s10 = scalar_lea.vmem %s2263_s11, 512  ;;  %p2265_p7 = scmp.lt.s32.totalorder %s3765_s18, %s2263_s11 }
 0x1ae   : > { %p2260_p1 = pnand %p2259_p11, %p3950_p6  ;;  %p2266_p3 = scmp.lt.s32.totalorder %s2264_s10, %s2258_s0 }
 0x1af   : > { %1497 = vst [vmem:[%s3672_s26 + $0x8] sm:$0xff] %v1426_v33 }
 0x1b0   : > { %p2261_p4 = pneg %p2260_p1  ;;  %p2267_p2 = por %p2266_p3, %p2265_p7 }
 0x1b2   : > { %p2268_p13 = pnand %p2267_p2, %p2261_p4 }
 0x1b4   : > { %2271 = shalt.err (!%p2268_p13)
}
 0x1b5   : > { %s2272_s26 = scalar_lea.hbm %s3763_s28, 256  ;;  %s2276_s14 = scalar_lea.hbm %s3820_s7, 512 }
 0x1b6   : > { %p2273_p8 = scmp.ne.s32.totalorder %s3763_s28, %s2272_s26  ;;  %p2277_p0 = scmp.lt.u32.totalorder %s3763_s28, %s3820_s7 }
 0x1b7   : > { %p2278_p5 = scmp.lt.u32.totalorder %s2276_s14, %s2272_s26  ;;  %p2280_p11 = scmp.lt.u32.totalorder %s2272_s26, %s3763_s28 }
 0x1b8   : > { %p2274_p9 = pnand %p2273_p8, %p3950_p6 }
 0x1b9   : > { %p2279_p10 = por %p2278_p5, %p2277_p0 }
 0x1ba   : > { %p2275_p12 = pneg %p2274_p9 }
 0x1bb   : > { %p2281_p1 = por %p2280_p11, %p2279_p10 }
 0x1bd   : > { %p2282_p4 = pnand %p2281_p1, %p2275_p12 }
 0x1bf   : > { %2285 = shalt.err (!%p2282_p4)
}
 0x1c0   : > { %1790 = dma.vmem_to_hbm [thread:$0]  (%p3950_p6), %s3765_s18, 256, %s3763_s28, %s3699_s1, %s2341_s23, %s2342_s29, %s2343_s9  }
 0x1c1 PF: > { %s3951_s20 = sld [smem:[#allocation19_spill]]  ;;  %s1566_s13 = sand.u32 1, %s2320_s24  }
 0x1c2   : > { %p3953_p3 = scmp.ge.s32.totalorder %s2332_s27, 2  ;;  %s1567_s30 = scalar_lea.sflag [#allocation4], %s1566_s13 }
 0x1c7   : > { %p3952_p7 = scmp.ne.s32.totalorder %s3951_s20, 0 }
 0x1c9   : > { %p1805_p2 = pnand %p3953_p3, %p3952_p7 }
 0x1cb   : > { %2311 = dma.done.wait (!%p1805_p2), %s1567_s30, 256  }
 0x1cc   : > { %2313 = vsyncadd (!%p1805_p2), %s1567_s30, 4294967040  ;;  %s3954_s12 = sadd.s32 4294967294, %s2332_s27  }
 0x1cd   : > { %s1575_s21 = sand.u32 1, %s3954_s12  }
 0x1ce   : > { %s1576_s15 = scalar_lea.sflag [#allocation10], %s1575_s21 }
 0x1cf   : > { %2315 = dma.done.wait (!%p1805_p2), %s1576_s15, 512  }
 0x1d0   : > { %2317 = vsyncadd (!%p1805_p2), %s1576_s15, 4294966784  ;;  %s3955_s27 = sld [smem:[#allocation17_spill]]  ;;  %s3956_s1 = sld [smem:[#allocation16_spill]] }
 0x1d1   : > { %s3957_s26 = sld [smem:[#allocation18_spill]]  ;;  %s3958_s24 = smov %s2324_s25 }
 0x1d6   : > { %p27_p6 = scmp.ge.s32.totalorder %s3955_s27, 4   ;;  %s3959_s25 = smov %s3956_s1 }
 0x1d8   :  { %29 = sbr.rel (!%p27_p6) target bundleno = 12 (0xc), region = 147 }
 0x1df   :  { %1590 = vsyncpa [#allocation3], 1 }
 0x1e0   :  { %1592 = vsyncpa [#allocation3 + $0x1], 1 }
 0x1e1   :  { %1593 = vsyncpa [#allocation6], 1 }
 0x1e2   :  { %1595 = vsyncpa [#allocation6 + $0x1], 1 }
 0x1e3   :  { %1596 = vsyncpa [#allocation4], 1 }
 0x1e4   :  { %1598 = vsyncpa [#allocation4 + $0x1], 1 }
 0x1e5   :  { %1599 = vsyncpa [#allocation10], 1 }
 0x1e6   :  { %1601 = vsyncpa [#allocation10 + $0x1], 1 }

</bundles_post_ra>
